<compile_context>
chip_gen: v6e
topology: v6e:2x2x1
jax: 0.10.0
libtpu: 0.0.40
codegen_flags: <defaults>
</compile_context>

<pallas_src>
import jax
import jax.numpy as jnp
from jax.experimental import pallas as pl
from jax.experimental.pallas import tpu as pltpu


_VMEM_LIMIT_BYTES = 32 * 1024 * 1024   # safe on v5e/v6e/v7x (v7x: 64 MiB physical)
_CONV_TILE_M = 4096                    # pooled-position rows per grid step
_HEAD_TILE_M = 2048                    # batch rows per grid step
_ROW_ALIGN = 16                        # bf16 sublane packing: keep row tiles 16-aligned


def _compiler_params():
    return pltpu.CompilerParams(
        dimension_semantics=("parallel",),
        vmem_limit_bytes=_VMEM_LIMIT_BYTES)


def _round_up(x, m):
    return (x + m - 1) // m * m


def _pick_row_tile(m, max_tile):
    """(padded_rows, row_tile).

    Rows are 16-aligned (bf16 sublane packing).  Prefers a divisor tile so the
    big parity/patch tensors are never re-materialized just to append pad
    rows, and splits a single comfortable block in two so v7x's second
    TensorCore gets work.
    """
    m_pad = _round_up(m, _ROW_ALIGN)
    if m_pad <= max_tile:
        if m_pad % (2 * _ROW_ALIGN) == 0 and m_pad // 2 >= 1024:
            return m_pad, m_pad // 2          # 2-step grid for v7x's 2 TCs
        return m_pad, m_pad                   # single full block
    t = (max_tile // _ROW_ALIGN) * _ROW_ALIGN
    while t >= _ROW_ALIGN:                    # largest 16-aligned divisor <= max_tile
        if m_pad % t == 0:
            return m_pad, t
        t -= _ROW_ALIGN
    t = (max_tile // _ROW_ALIGN) * _ROW_ALIGN  # unreachable (t=16 always divides)
    return _round_up(m_pad, t), t


# ----------------------------- Pallas kernels ------------------------------

def conv_pool_kernel(p_ref, w_ref, b_ref, o_ref):
    """Fused im2col-GEMM conv + bias + ReLU + 2x2 max-pool.

    p_ref holds a (4, tm, K) block: the im2col patches for the four 2x2
    pool-window parities.  One (4*tm, K) @ (K, Cout) MXU dot (f32 accumulation),
    then  max over the four parity row-groups == MaxPool2d(2)(ReLU(conv)).
    """
    _, tm, k = p_ref.shape
    acc = jnp.dot(p_ref[...].reshape(4 * tm, k), w_ref[...],
                  preferred_element_type=jnp.float32)
    acc = jnp.maximum(acc + b_ref[...], 0.0)
    o_ref[...] = jnp.maximum(
        jnp.maximum(acc[0 * tm:1 * tm], acc[1 * tm:2 * tm]),
        jnp.maximum(acc[2 * tm:3 * tm], acc[3 * tm:4 * tm]),
    ).astype(o_ref.dtype)


def head_kernel(f_ref, w3_ref, b3_ref, w4_ref, b4_ref, w5_ref, b5_ref, o_ref):
    """block3 conv (1x1 spatial -> plain GEMM) + ReLU + classifier1 + ReLU + fc.

    bf16 operands on the MXU, f32 accumulation / bias / ReLU, f32 logits out.
    """
    f3 = jnp.maximum(
        jnp.dot(f_ref[...], w3_ref[...], preferred_element_type=jnp.float32)
        + b3_ref[...], 0.0)
    feat = jnp.maximum(
        jnp.dot(f3.astype(jnp.bfloat16), w4_ref[...],
                preferred_element_type=jnp.float32) + b4_ref[...], 0.0)
    o_ref[...] = (jnp.dot(feat.astype(jnp.bfloat16), w5_ref[...],
                          preferred_element_type=jnp.float32)
                  + b5_ref[...]).astype(o_ref.dtype)


# ------------------------------ glue wrappers -------------------------------

def conv_relu_pool(x, w, b, *, tile_m=_CONV_TILE_M):
    """Conv2d(5x5, stride=1, VALID) + ReLU + MaxPool2d(2) as ONE Pallas kernel.

    The parity-split im2col is built directly from stride-2 slices of the
    input (no full-resolution patch tensor); all compute runs in the kernel.
    Output activations are stored in bf16.
    """
    kh, kw, cin, cout = w.shape
    n, h, wd, _ = x.shape
    ho, wo = h - kh + 1, wd - kw + 1
    assert ho % 2 == 0 and wo % 2 == 0, "2x2 pool must tile the conv output"
    hp, wp = ho // 2, wo // 2
    k = kh * kw * cin
    m = n * hp * wp

    xb = x.astype(jnp.bfloat16)

    def parity(py, px):
        # Patches of the conv outputs at positions (2*yp+py, 2*xp+px): gathered
        # straight from stride-2 slices of xb -- no full-res intermediate.
        cols = [xb[:, py + i: py + i + ho: 2, px + j: px + j + wo: 2, :]
                for i in range(kh) for j in range(kw)]
        return jnp.concatenate(cols, axis=-1).reshape(m, k)

    patches = jnp.stack(
        [parity(0, 0), parity(1, 0), parity(0, 1), parity(1, 1)], axis=0)  # (4, m, K)

    m_pad, tm = _pick_row_tile(m, tile_m)
    if m_pad != m:
        patches = jnp.pad(patches, ((0, 0), (0, m_pad - m), (0, 0)))

    w2d = w.reshape(k, cout).astype(jnp.bfloat16)
    b2d = b.reshape(1, cout).astype(jnp.float32)

    cost = pl.CostEstimate(
        flops=2 * 4 * m_pad * k * cout,
        transcendentals=0,
        bytes_accessed=4 * m_pad * k * 2 + k * cout * 2 + cout * 4 + m_pad * cout * 2)

    out = pl.pallas_call(
        conv_pool_kernel,
        out_shape=jax.ShapeDtypeStruct((m_pad, cout), jnp.bfloat16),
        grid=(m_pad // tm,),
        in_specs=[pl.BlockSpec((4, tm, k), lambda i: (0, i, 0)),
                  pl.BlockSpec((k, cout), lambda i: (0, 0)),     # weight: VMEM-resident
                  pl.BlockSpec((1, cout), lambda i: (0, 0))],    # bias:   VMEM-resident
        out_specs=pl.BlockSpec((tm, cout), lambda i: (i, 0)),
        compiler_params=_compiler_params(),
        cost_estimate=cost,
    )(patches, w2d, b2d)
    return out[:m].reshape(n, hp, wp, cout)


def fused_head(f2, w3, b3, wc1, bc1, wfc, bfc, *, tile_m=_HEAD_TILE_M):
    """block3 conv (K=400 -> 120) + ReLU + classifier1 + ReLU + fc, one kernel.

    All three weight sets (<130 KB in bf16) stay VMEM-resident across grid steps.
    """
    n = f2.shape[0]
    k = w3.shape[0] * w3.shape[1] * w3.shape[2]     # 400
    c3 = w3.shape[3]                                # 120
    cf = wc1.shape[1]                               # 84
    nc = wfc.shape[1]                               # num_classes
    flat = f2.reshape(n, k).astype(jnp.bfloat16)

    m_pad, tm = _pick_row_tile(n, tile_m)
    if m_pad != n:
        flat = jnp.pad(flat, ((0, m_pad - n), (0, 0)))

    cost = pl.CostEstimate(
        flops=2 * m_pad * (k * c3 + c3 * cf + cf * nc),
        transcendentals=0,
        bytes_accessed=(m_pad * k * 2 + (k * c3 + c3 * cf + cf * nc) * 2
                        + (c3 + cf + nc) * 4 + m_pad * nc * 4))

    out = pl.pallas_call(
        head_kernel,
        out_shape=jax.ShapeDtypeStruct((m_pad, nc), jnp.float32),
        grid=(m_pad // tm,),
        in_specs=[pl.BlockSpec((tm, k), lambda i: (i, 0)),
                  pl.BlockSpec((k, c3), lambda i: (0, 0)),
                  pl.BlockSpec((1, c3), lambda i: (0, 0)),
                  pl.BlockSpec((c3, cf), lambda i: (0, 0)),
                  pl.BlockSpec((1, cf), lambda i: (0, 0)),
                  pl.BlockSpec((cf, nc), lambda i: (0, 0)),
                  pl.BlockSpec((1, nc), lambda i: (0, 0))],
        out_specs=pl.BlockSpec((tm, nc), lambda i: (i, 0)),
        compiler_params=_compiler_params(),
        cost_estimate=cost,
    )(flat,
      w3.reshape(k, c3).astype(jnp.bfloat16), b3.reshape(1, c3).astype(jnp.float32),
      wc1.astype(jnp.bfloat16), bc1.reshape(1, cf).astype(jnp.float32),
      wfc.astype(jnp.bfloat16), bfc.reshape(1, nc).astype(jnp.float32))
    return out[:n]


# ------------------------------- LeNet model --------------------------------

def init_lenet_params(key, num_classes, num_channel=3):
    ks = jax.random.split(key, 10)
    s = 0.1
    return {
        "w1": s * jax.random.normal(ks[0], (5, 5, num_channel, 6), jnp.float32),
        "b1": s * jax.random.normal(ks[1], (6,), jnp.float32),
        "w2": s * jax.random.normal(ks[2], (5, 5, 6, 16), jnp.float32),
        "b2": s * jax.random.normal(ks[3], (16,), jnp.float32),
        "w3": s * jax.random.normal(ks[4], (5, 5, 16, 120), jnp.float32),
        "b3": s * jax.random.normal(ks[5], (120,), jnp.float32),
        "wc1": s * jax.random.normal(ks[6], (120, 84), jnp.float32),
        "bc1": s * jax.random.normal(ks[7], (84,), jnp.float32),
        "wfc": s * jax.random.normal(ks[8], (84, num_classes), jnp.float32),
        "bfc": s * jax.random.normal(ks[9], (num_classes,), jnp.float32),
    }


@jax.jit
def lenet_forward(x_nchw, params):
    """Returns logits_cls (== LeNet.forward(x))."""
    n, c, h, w = x_nchw.shape
    # classifier1 (in_features=120) structurally locks the model to 28x28:
    # 28 -(pad2 conv5, pool2)-> 14 -(conv5, pool2)-> 5 -(conv5)-> 1x1x120.
    assert (h, w) == (28, 28), "openood LeNet only supports 28x28 inputs"
    x = jnp.transpose(x_nchw, (0, 2, 3, 1)).astype(jnp.bfloat16)     # NCHW->NHWC, bf16
    xp = jnp.pad(x, ((0, 0), (2, 2), (2, 2), (0, 0)))                # conv1 pad=2
    f1 = conv_relu_pool(xp, params["w1"], params["b1"])              # (N,14,14,6)  bf16
    f2 = conv_relu_pool(f1, params["w2"], params["b2"])              # (N,5,5,16)   bf16
    return fused_head(f2, params["w3"], params["b3"],
                      params["wc1"], params["bc1"],
                      params["wfc"], params["bfc"])                  # (N,classes)  f32


# --------------------------- pure-JAX reference -----------------------------

def lenet_reference(x_nchw, params):
    x = jnp.transpose(x_nchw, (0, 2, 3, 1)).astype(jnp.float32)

    def conv(x, w, b, padding):
        y = jax.lax.conv_general_dilated(
            x, w, (1, 1), padding,
            dimension_numbers=("NHWC", "HWIO", "NHWC"))
        return jax.nn.relu(y + b)

    def pool(y):
        return jax.lax.reduce_window(y, -jnp.inf, jax.lax.max,
                                     (1, 2, 2, 1), (1, 2, 2, 1), "VALID")

    f1 = pool(conv(x, params["w1"], params["b1"], [(2, 2), (2, 2)]))
    f2 = pool(conv(f1, params["w2"], params["b2"], "VALID"))
    f3 = conv(f2, params["w3"], params["b3"], "VALID").reshape(x.shape[0], -1)
    feat = jax.nn.relu(f3 @ params["wc1"] + params["bc1"])
    return feat @ params["wfc"] + params["bfc"]


# ---------------------------------- main -------------------------------------

if __name__ == "__main__":
    key = jax.random.PRNGKey(0)
    kx, kp = jax.random.split(key)

    num_classes = 10
    num_channel = 3
    batch = 2
    # 28x28 spatial is required so block3 output flattens to 120 features.
    x = jax.random.normal(kx, (batch, num_channel, 28, 28), jnp.float32)

    params = init_lenet_params(kp, num_classes, num_channel)

    logits = jax.block_until_ready(lenet_forward(x, params))
    ref = jax.block_until_ready(lenet_reference(x, params))

    assert logits.shape == (batch, num_classes), logits.shape
    assert bool(jnp.all(jnp.isfinite(logits)))
    # bf16 activations/weights on the MXU (f32 accumulation) -> loose tolerance
    # vs the pure-f32 reference.
    assert bool(jnp.allclose(logits, ref, rtol=5e-2, atol=5e-2)), (
        "mismatch vs. reference: max abs diff "
        f"{float(jnp.max(jnp.abs(logits - ref)))}")

    print("KERNEL_OK")
</pallas_src>

<mosaic_0001>
module attributes {stable_mosaic.version = 11 : i64} {
  func.func @conv_pool_kernel(%arg0: i32, %arg1: memref<4x400x75xbf16, #tpu.memory_space<vmem>>, %arg2: memref<75x6xbf16, #tpu.memory_space<vmem>>, %arg3: memref<1x6xf32, #tpu.memory_space<vmem>>, %arg4: memref<400x6xbf16, #tpu.memory_space<vmem>>) attributes {dimension_semantics = [#tpu.dimension_semantics<parallel>], iteration_bounds = array<i64: 1>, scalar_prefetch = 0 : i64, scratch_operands = 0 : i64, tpu.core_type = #tpu.core_type<tc>, window_params = [{transform_indices = @transform_0, window_bounds = array<i64: 4, 400, 75>}, {pipeline_mode = #tpu.pipeline_mode<synchronous>, transform_indices = @transform_1, window_bounds = array<i64: 75, 6>}, {pipeline_mode = #tpu.pipeline_mode<synchronous>, transform_indices = @transform_2, window_bounds = array<i64: 1, 6>}, {transform_indices = @transform_3, window_bounds = array<i64: 400, 6>}]} {
    %c0 = arith.constant 0 : index
    %c0_0 = arith.constant 0 : index
    %c0_1 = arith.constant 0 : index
    %0 = vector.load %arg1[%c0, %c0_0, %c0_1] : memref<4x400x75xbf16, #tpu.memory_space<vmem>>, vector<4x400x75xbf16>
    %1 = vector.shape_cast %0 : vector<4x400x75xbf16> to vector<1600x75xbf16>
    %c0_2 = arith.constant 0 : index
    %c0_3 = arith.constant 0 : index
    %2 = vector.load %arg2[%c0_2, %c0_3] : memref<75x6xbf16, #tpu.memory_space<vmem>>, vector<75x6xbf16>
    %cst = arith.constant dense<0.000000e+00> : vector<1600x6xf32>
    %3 = tpu.matmul %1, %2, %cst {dimension_numbers = #tpu.dot_dimension_numbers<[1], [0], [0], [1], [0, 0, 1, 1], [], []>} : vector<1600x75xbf16>, vector<75x6xbf16>, vector<1600x6xf32> -> vector<1600x6xf32>
    %c0_4 = arith.constant 0 : index
    %c0_5 = arith.constant 0 : index
    %4 = vector.load %arg3[%c0_4, %c0_5] : memref<1x6xf32, #tpu.memory_space<vmem>>, vector<1x6xf32>
    %5 = vector.broadcast %4 : vector<1x6xf32> to vector<1600x6xf32>
    %6 = arith.addf %3, %5 : vector<1600x6xf32>
    %cst_6 = arith.constant 0.000000e+00 : f32
    %7 = vector.broadcast %cst_6 : f32 to vector<1600x6xf32>
    %8 = arith.maximumf %6, %7 : vector<1600x6xf32>
    %9 = vector.extract_strided_slice %8 {offsets = [0, 0], sizes = [400, 6], strides = [1, 1]} : vector<1600x6xf32> to vector<400x6xf32>
    %10 = vector.extract_strided_slice %8 {offsets = [400, 0], sizes = [400, 6], strides = [1, 1]} : vector<1600x6xf32> to vector<400x6xf32>
    %11 = arith.maximumf %9, %10 : vector<400x6xf32>
    %12 = vector.extract_strided_slice %8 {offsets = [800, 0], sizes = [400, 6], strides = [1, 1]} : vector<1600x6xf32> to vector<400x6xf32>
    %13 = vector.extract_strided_slice %8 {offsets = [1200, 0], sizes = [400, 6], strides = [1, 1]} : vector<1600x6xf32> to vector<400x6xf32>
    %14 = arith.maximumf %12, %13 : vector<400x6xf32>
    %15 = arith.maximumf %11, %14 : vector<400x6xf32>
    %16 = arith.truncf %15 : vector<400x6xf32> to vector<400x6xbf16>
    %c0_7 = arith.constant 0 : index
    %c0_8 = arith.constant 0 : index
    %17 = vector.load %arg4[%c0_7, %c0_8] : memref<400x6xbf16, #tpu.memory_space<vmem>>, vector<400x6xbf16>
    tpu.vector_store %arg4[%c0_7, %c0_8], %16 {strides = array<i32>} : memref<400x6xbf16, #tpu.memory_space<vmem>>, vector<400x6xbf16>,
    return
  }
  func.func @transform_0(%arg0: i32) -> (i32, i32, i32) {
    %c0_i32 = arith.constant 0 : i32
    %c0_i32_0 = arith.constant 0 : i32
    %c0_i32_1 = arith.constant 0 : i32
    return %c0_i32, %arg0, %c0_i32_0 : i32, i32, i32
  }
  func.func @transform_1(%arg0: i32) -> (i32, i32) {
    %c0_i32 = arith.constant 0 : i32
    %c0_i32_0 = arith.constant 0 : i32
    %c0_i32_1 = arith.constant 0 : i32
    return %c0_i32, %c0_i32_0 : i32, i32
  }
  func.func @transform_2(%arg0: i32) -> (i32, i32) {
    %c0_i32 = arith.constant 0 : i32
    %c0_i32_0 = arith.constant 0 : i32
    %c0_i32_1 = arith.constant 0 : i32
    return %c0_i32, %c0_i32_0 : i32, i32
  }
  func.func @transform_3(%arg0: i32) -> (i32, i32) {
    %c0_i32 = arith.constant 0 : i32
    %c0_i32_0 = arith.constant 0 : i32
    return %arg0, %c0_i32 : i32, i32
  }
}

module attributes {stable_mosaic.version = 11 : i64} {
  func.func @conv_pool_kernel(%arg0: i32, %arg1: memref<4x64x150xbf16, #tpu.memory_space<vmem>>, %arg2: memref<150x16xbf16, #tpu.memory_space<vmem>>, %arg3: memref<1x16xf32, #tpu.memory_space<vmem>>, %arg4: memref<64x16xbf16, #tpu.memory_space<vmem>>) attributes {dimension_semantics = [#tpu.dimension_semantics<parallel>], iteration_bounds = array<i64: 1>, scalar_prefetch = 0 : i64, scratch_operands = 0 : i64, tpu.core_type = #tpu.core_type<tc>, window_params = [{transform_indices = @transform_0, window_bounds = array<i64: 4, 64, 150>}, {pipeline_mode = #tpu.pipeline_mode<synchronous>, transform_indices = @transform_1, window_bounds = array<i64: 150, 16>}, {pipeline_mode = #tpu.pipeline_mode<synchronous>, transform_indices = @transform_2, window_bounds = array<i64: 1, 16>}, {transform_indices = @transform_3, window_bounds = array<i64: 64, 16>}]} {
    %c0 = arith.constant 0 : index
    %c0_0 = arith.constant 0 : index
    %c0_1 = arith.constant 0 : index
    %0 = vector.load %arg1[%c0, %c0_0, %c0_1] : memref<4x64x150xbf16, #tpu.memory_space<vmem>>, vector<4x64x150xbf16>
    %1 = vector.shape_cast %0 : vector<4x64x150xbf16> to vector<256x150xbf16>
    %c0_2 = arith.constant 0 : index
    %c0_3 = arith.constant 0 : index
    %2 = vector.load %arg2[%c0_2, %c0_3] : memref<150x16xbf16, #tpu.memory_space<vmem>>, vector<150x16xbf16>
    %cst = arith.constant dense<0.000000e+00> : vector<256x16xf32>
    %3 = tpu.matmul %1, %2, %cst {dimension_numbers = #tpu.dot_dimension_numbers<[1], [0], [0], [1], [0, 0, 1, 1], [], []>} : vector<256x150xbf16>, vector<150x16xbf16>, vector<256x16xf32> -> vector<256x16xf32>
    %c0_4 = arith.constant 0 : index
    %c0_5 = arith.constant 0 : index
    %4 = vector.load %arg3[%c0_4, %c0_5] : memref<1x16xf32, #tpu.memory_space<vmem>>, vector<1x16xf32>
    %5 = vector.broadcast %4 : vector<1x16xf32> to vector<256x16xf32>
    %6 = arith.addf %3, %5 : vector<256x16xf32>
    %cst_6 = arith.constant 0.000000e+00 : f32
    %7 = vector.broadcast %cst_6 : f32 to vector<256x16xf32>
    %8 = arith.maximumf %6, %7 : vector<256x16xf32>
    %9 = vector.extract_strided_slice %8 {offsets = [0, 0], sizes = [64, 16], strides = [1, 1]} : vector<256x16xf32> to vector<64x16xf32>
    %10 = vector.extract_strided_slice %8 {offsets = [64, 0], sizes = [64, 16], strides = [1, 1]} : vector<256x16xf32> to vector<64x16xf32>
    %11 = arith.maximumf %9, %10 : vector<64x16xf32>
    %12 = vector.extract_strided_slice %8 {offsets = [128, 0], sizes = [64, 16], strides = [1, 1]} : vector<256x16xf32> to vector<64x16xf32>
    %13 = vector.extract_strided_slice %8 {offsets = [192, 0], sizes = [64, 16], strides = [1, 1]} : vector<256x16xf32> to vector<64x16xf32>
    %14 = arith.maximumf %12, %13 : vector<64x16xf32>
    %15 = arith.maximumf %11, %14 : vector<64x16xf32>
    %16 = arith.truncf %15 : vector<64x16xf32> to vector<64x16xbf16>
    %c0_7 = arith.constant 0 : index
    %c0_8 = arith.constant 0 : index
    %17 = vector.load %arg4[%c0_7, %c0_8] : memref<64x16xbf16, #tpu.memory_space<vmem>>, vector<64x16xbf16>
    tpu.vector_store %arg4[%c0_7, %c0_8], %16 {strides = array<i32>} : memref<64x16xbf16, #tpu.memory_space<vmem>>, vector<64x16xbf16>,
    return
  }
  func.func @transform_0(%arg0: i32) -> (i32, i32, i32) {
    %c0_i32 = arith.constant 0 : i32
    %c0_i32_0 = arith.constant 0 : i32
    %c0_i32_1 = arith.constant 0 : i32
    return %c0_i32, %arg0, %c0_i32_0 : i32, i32, i32
  }
  func.func @transform_1(%arg0: i32) -> (i32, i32) {
    %c0_i32 = arith.constant 0 : i32
    %c0_i32_0 = arith.constant 0 : i32
    %c0_i32_1 = arith.constant 0 : i32
    return %c0_i32, %c0_i32_0 : i32, i32
  }
  func.func @transform_2(%arg0: i32) -> (i32, i32) {
    %c0_i32 = arith.constant 0 : i32
    %c0_i32_0 = arith.constant 0 : i32
    %c0_i32_1 = arith.constant 0 : i32
    return %c0_i32, %c0_i32_0 : i32, i32
  }
  func.func @transform_3(%arg0: i32) -> (i32, i32) {
    %c0_i32 = arith.constant 0 : i32
    %c0_i32_0 = arith.constant 0 : i32
    return %arg0, %c0_i32 : i32, i32
  }
}

module attributes {stable_mosaic.version = 11 : i64} {
  func.func @head_kernel(%arg0: i32, %arg1: memref<16x400xbf16, #tpu.memory_space<vmem>>, %arg2: memref<400x120xbf16, #tpu.memory_space<vmem>>, %arg3: memref<1x120xf32, #tpu.memory_space<vmem>>, %arg4: memref<120x84xbf16, #tpu.memory_space<vmem>>, %arg5: memref<1x84xf32, #tpu.memory_space<vmem>>, %arg6: memref<84x10xbf16, #tpu.memory_space<vmem>>, %arg7: memref<1x10xf32, #tpu.memory_space<vmem>>, %arg8: memref<16x10xf32, #tpu.memory_space<vmem>>) attributes {dimension_semantics = [#tpu.dimension_semantics<parallel>], iteration_bounds = array<i64: 1>, scalar_prefetch = 0 : i64, scratch_operands = 0 : i64, tpu.core_type = #tpu.core_type<tc>, window_params = [{transform_indices = @transform_0, window_bounds = array<i64: 16, 400>}, {pipeline_mode = #tpu.pipeline_mode<synchronous>, transform_indices = @transform_1, window_bounds = array<i64: 400, 120>}, {pipeline_mode = #tpu.pipeline_mode<synchronous>, transform_indices = @transform_2, window_bounds = array<i64: 1, 120>}, {pipeline_mode = #tpu.pipeline_mode<synchronous>, transform_indices = @transform_3, window_bounds = array<i64: 120, 84>}, {pipeline_mode = #tpu.pipeline_mode<synchronous>, transform_indices = @transform_4, window_bounds = array<i64: 1, 84>}, {pipeline_mode = #tpu.pipeline_mode<synchronous>, transform_indices = @transform_5, window_bounds = array<i64: 84, 10>}, {pipeline_mode = #tpu.pipeline_mode<synchronous>, transform_indices = @transform_6, window_bounds = array<i64: 1, 10>}, {transform_indices = @transform_7, window_bounds = array<i64: 16, 10>}]} {
    %c0 = arith.constant 0 : index
    %c0_0 = arith.constant 0 : index
    %0 = vector.load %arg1[%c0, %c0_0] : memref<16x400xbf16, #tpu.memory_space<vmem>>, vector<16x400xbf16>
    %c0_1 = arith.constant 0 : index
    %c0_2 = arith.constant 0 : index
    %1 = vector.load %arg2[%c0_1, %c0_2] : memref<400x120xbf16, #tpu.memory_space<vmem>>, vector<400x120xbf16>
    %cst = arith.constant dense<0.000000e+00> : vector<16x120xf32>
    %2 = tpu.matmul %0, %1, %cst {dimension_numbers = #tpu.dot_dimension_numbers<[1], [0], [0], [1], [0, 0, 1, 1], [], []>} : vector<16x400xbf16>, vector<400x120xbf16>, vector<16x120xf32> -> vector<16x120xf32>
    %c0_3 = arith.constant 0 : index
    %c0_4 = arith.constant 0 : index
    %3 = vector.load %arg3[%c0_3, %c0_4] : memref<1x120xf32, #tpu.memory_space<vmem>>, vector<1x120xf32>
    %4 = vector.broadcast %3 : vector<1x120xf32> to vector<16x120xf32>
    %5 = arith.addf %2, %4 : vector<16x120xf32>
    %cst_5 = arith.constant 0.000000e+00 : f32
    %6 = vector.broadcast %cst_5 : f32 to vector<16x120xf32>
    %7 = arith.maximumf %5, %6 : vector<16x120xf32>
    %8 = arith.truncf %7 : vector<16x120xf32> to vector<16x120xbf16>
    %c0_6 = arith.constant 0 : index
    %c0_7 = arith.constant 0 : index
    %9 = vector.load %arg4[%c0_6, %c0_7] : memref<120x84xbf16, #tpu.memory_space<vmem>>, vector<120x84xbf16>
    %cst_8 = arith.constant dense<0.000000e+00> : vector<16x84xf32>
    %10 = tpu.matmul %8, %9, %cst_8 {dimension_numbers = #tpu.dot_dimension_numbers<[1], [0], [0], [1], [0, 0, 1, 1], [], []>} : vector<16x120xbf16>, vector<120x84xbf16>, vector<16x84xf32> -> vector<16x84xf32>
    %c0_9 = arith.constant 0 : index
    %c0_10 = arith.constant 0 : index
    %11 = vector.load %arg5[%c0_9, %c0_10] : memref<1x84xf32, #tpu.memory_space<vmem>>, vector<1x84xf32>
    %12 = vector.broadcast %11 : vector<1x84xf32> to vector<16x84xf32>
    %13 = arith.addf %10, %12 : vector<16x84xf32>
    %cst_11 = arith.constant 0.000000e+00 : f32
    %14 = vector.broadcast %cst_11 : f32 to vector<16x84xf32>
    %15 = arith.maximumf %13, %14 : vector<16x84xf32>
    %16 = arith.truncf %15 : vector<16x84xf32> to vector<16x84xbf16>
    %c0_12 = arith.constant 0 : index
    %c0_13 = arith.constant 0 : index
    %17 = vector.load %arg6[%c0_12, %c0_13] : memref<84x10xbf16, #tpu.memory_space<vmem>>, vector<84x10xbf16>
    %cst_14 = arith.constant dense<0.000000e+00> : vector<16x10xf32>
    %18 = tpu.matmul %16, %17, %cst_14 {dimension_numbers = #tpu.dot_dimension_numbers<[1], [0], [0], [1], [0, 0, 1, 1], [], []>} : vector<16x84xbf16>, vector<84x10xbf16>, vector<16x10xf32> -> vector<16x10xf32>
    %c0_15 = arith.constant 0 : index
    %c0_16 = arith.constant 0 : index
    %19 = vector.load %arg7[%c0_15, %c0_16] : memref<1x10xf32, #tpu.memory_space<vmem>>, vector<1x10xf32>
    %20 = vector.broadcast %19 : vector<1x10xf32> to vector<16x10xf32>
    %21 = arith.addf %18, %20 : vector<16x10xf32>
    %c0_17 = arith.constant 0 : index
    %c0_18 = arith.constant 0 : index
    %22 = vector.load %arg8[%c0_17, %c0_18] : memref<16x10xf32, #tpu.memory_space<vmem>>, vector<16x10xf32>
    tpu.vector_store %arg8[%c0_17, %c0_18], %21 {strides = array<i32>} : memref<16x10xf32, #tpu.memory_space<vmem>>, vector<16x10xf32>,
    return
  }
  func.func @transform_0(%arg0: i32) -> (i32, i32) {
    %c0_i32 = arith.constant 0 : i32
    %c0_i32_0 = arith.constant 0 : i32
    return %arg0, %c0_i32 : i32, i32
  }
  func.func @transform_1(%arg0: i32) -> (i32, i32) {
    %c0_i32 = arith.constant 0 : i32
    %c0_i32_0 = arith.constant 0 : i32
    %c0_i32_1 = arith.constant 0 : i32
    return %c0_i32, %c0_i32_0 : i32, i32
  }
  func.func @transform_2(%arg0: i32) -> (i32, i32) {
    %c0_i32 = arith.constant 0 : i32
    %c0_i32_0 = arith.constant 0 : i32
    %c0_i32_1 = arith.constant 0 : i32
    return %c0_i32, %c0_i32_0 : i32, i32
  }
  func.func @transform_3(%arg0: i32) -> (i32, i32) {
    %c0_i32 = arith.constant 0 : i32
    %c0_i32_0 = arith.constant 0 : i32
    %c0_i32_1 = arith.constant 0 : i32
    return %c0_i32, %c0_i32_0 : i32, i32
  }
  func.func @transform_4(%arg0: i32) -> (i32, i32) {
    %c0_i32 = arith.constant 0 : i32
    %c0_i32_0 = arith.constant 0 : i32
    %c0_i32_1 = arith.constant 0 : i32
    return %c0_i32, %c0_i32_0 : i32, i32
  }
  func.func @transform_5(%arg0: i32) -> (i32, i32) {
    %c0_i32 = arith.constant 0 : i32
    %c0_i32_0 = arith.constant 0 : i32
    %c0_i32_1 = arith.constant 0 : i32
    return %c0_i32, %c0_i32_0 : i32, i32
  }
  func.func @transform_6(%arg0: i32) -> (i32, i32) {
    %c0_i32 = arith.constant 0 : i32
    %c0_i32_0 = arith.constant 0 : i32
    %c0_i32_1 = arith.constant 0 : i32
    return %c0_i32, %c0_i32_0 : i32, i32
  }
  func.func @transform_7(%arg0: i32) -> (i32, i32) {
    %c0_i32 = arith.constant 0 : i32
    %c0_i32_0 = arith.constant 0 : i32
    return %arg0, %c0_i32 : i32, i32
  }
}

</mosaic_0001>

<bundles_post_ra>
// kernel: lenet_forward.3
= control target key start
LH: loop header
LB: loop body
LE: loop exit
PB: predicated region body
PF: predicated region fallthrough
CT: control target
= control target key end

     0   :  { %vm1062_vm0 = vcmask 1044480   ;;  %vm1063_vm1 = vcmask 1045504   ;;  %v3245_v1 = vmov 65535   ;;  %vm761_vm2 = vcmask 613376   ;;  %s4800_s1 = inlined_call_operand.vmem [shape: bf16[75,6], index: 1, kind: input, shape index: {}]   ;;  %s4801_s0 = inlined_call_operand.vmem [shape: bf16[4,400,75], index: 0, kind: input, shape index: {}]   ;;  %s4802_s2 = inlined_call_operand.vmem [shape: f32[1,6], index: 2, kind: input, shape index: {}]   ;;  %s4803_s3 = inlined_call_operand.vmem [shape: bf16[400,6], index: 3, kind: output, shape index: {}]  }
   0x1   :  { %v3139_v0 = vld [vmem:[%s4800_s1 + $0x20] sm:$0x3f]   ;;  %v1064_v2 = vsel %vm1062_vm0, 4294967295, %v3245_v1  ;;  %v3140_v5 = vld [vmem:[%s4800_s1 + $0x18] sm:$0xff]   ;;  %v3145_v7 = vld [vmem:[%s4801_s0 + $0x190] sm:$0xff]   ;;  %vm2452_vm3 = vcmask 44032  }
   0x2   :  { %v1065_v3 = vsel %vm1063_vm1, %v1064_v2, 0  ;;  %v3144_v6 = vld [vmem:[%s4801_s0] sm:$0xff]   ;;  %v3141_v8 = vld [vmem:[%s4800_s1 + $0x10] sm:$0xff]   ;;  %3028 = vmatprep.mubr.msk.bf16.mxu1 %vm761_vm2, %v3145_v7  ;;  %v3142_v9 = vld [vmem:[%s4800_s1 + $0x8] sm:$0xff]  }
   0x3   :  { %v1067_v4 = vand.u32 %v3139_v0, %v1065_v3  ;;  %2928 = vmatprep.mubr.msk.bf16.mxu0 %vm761_vm2, %v3144_v6  ;;  %v3143_v10 = vld [vmem:[%s4800_s1] sm:$0xff]   ;;  %v3146_v11 = vld [vmem:[%s4801_s0 + $0x8] sm:$0xff]   ;;  %v3147_v12 = vld [vmem:[%s4801_s0 + $0x198] sm:$0xff]  }
   0x4   :  { %v3148_v13 = vld [vmem:[%s4801_s0 + $0x10] sm:$0xff]   ;;  %v3149_v14 = vld [vmem:[%s4801_s0 + $0x1a0] sm:$0xff]   ;;  %v3150_v15 = vld [vmem:[%s4801_s0 + $0x18] sm:$0xff]  }
   0x5   :  { %2918 = vmatprep.subr.bf16.mxu0 %v1067_v4  ;;  %3128 = vmatprep.subr.bf16.mxu1 %v1067_v4  ;;  %v3151_v16 = vld [vmem:[%s4801_s0 + $0x1a8] sm:$0xff]   ;;  %v3152_v17 = vld [vmem:[%s4801_s0 + $0x20] sm:$0xff]   ;;  %v3153_v18 = vld [vmem:[%s4801_s0 + $0x1b0] sm:$0xff]  }
   0x6   :  { %2919 = vmatpush3.bf16.msra.mxu0 %v1067_v4  ;;  %3133 = vmatpush3.bf16.msra.mxu1 %v1067_v4  ;;  %v3154_v19 = vld [vmem:[%s4801_s0 + $0x28] sm:$0xff]   ;;  %v3155_v20 = vld [vmem:[%s4801_s0 + $0x1b8] sm:$0xff]   ;;  %v3156_v21 = vld [vmem:[%s4801_s0 + $0x30] sm:$0xff]  }
   0x7   :  { %2920 = vmatprep.subr.bf16.mxu0 %v3140_v5  ;;  %3129 = vmatprep.subr.bf16.mxu1 %v3140_v5  ;;  %v3157_v22 = vld [vmem:[%s4801_s0 + $0x1c0] sm:$0xff]   ;;  %v3158_v23 = vld [vmem:[%s4801_s0 + $0x38] sm:$0xff]   ;;  %v3159_v24 = vld [vmem:[%s4801_s0 + $0x1c8] sm:$0xff]  }
   0x8   :  { %v3160_v25 = vld [vmem:[%s4801_s0 + $0x40] sm:$0xff]   ;;  %v3161_v26 = vld [vmem:[%s4801_s0 + $0x1d0] sm:$0xff]   ;;  %v3162_v27 = vld [vmem:[%s4801_s0 + $0x48] sm:$0xff]  }
   0x9   :  { %v3163_v28 = vld [vmem:[%s4801_s0 + $0x1d8] sm:$0xff]   ;;  %v3164_v29 = vld [vmem:[%s4801_s0 + $0x50] sm:$0xff]   ;;  %v3165_v30 = vld [vmem:[%s4801_s0 + $0x1e0] sm:$0xff]  }
   0xa   :  { %2921 = vmatpush3.bf16.msra.mxu0 %v3140_v5  ;;  %3134 = vmatpush3.bf16.msra.mxu1 %v3140_v5  ;;  %v3166_v31 = vld [vmem:[%s4801_s0 + $0x58] sm:$0xff]   ;;  %v3167_v32 = vld [vmem:[%s4801_s0 + $0x1e8] sm:$0xff]   ;;  %v3168_v33 = vld [vmem:[%s4801_s0 + $0x60] sm:$0xff]  }
   0xb   :  { %2922 = vmatprep.subr.bf16.mxu0 %v3141_v8  ;;  %3130 = vmatprep.subr.bf16.mxu1 %v3141_v8  ;;  %v3169_v34 = vld [vmem:[%s4801_s0 + $0x1f0] sm:$0xff]   ;;  %v3170_v35 = vld [vmem:[%s4801_s0 + $0x68] sm:$0xff]   ;;  %v3171_v36 = vld [vmem:[%s4801_s0 + $0x1f8] sm:$0xff]  }
   0xc   :  { %v3172_v37 = vld [vmem:[%s4801_s0 + $0x70] sm:$0xff]   ;;  %v3173_v38 = vld [vmem:[%s4801_s0 + $0x200] sm:$0xff]   ;;  %v3174_v39 = vld [vmem:[%s4801_s0 + $0x78] sm:$0xff]  }
   0xd   :  { %v3175_v40 = vld [vmem:[%s4801_s0 + $0x208] sm:$0xff]   ;;  %v3176_v41 = vld [vmem:[%s4801_s0 + $0x80] sm:$0xff]   ;;  %v3177_v42 = vld [vmem:[%s4801_s0 + $0x210] sm:$0xff]  }
   0xe   :  { %2923 = vmatpush3.bf16.msra.mxu0 %v3141_v8  ;;  %3135 = vmatpush3.bf16.msra.mxu1 %v3141_v8  ;;  %v3178_v43 = vld [vmem:[%s4801_s0 + $0x88] sm:$0xff]   ;;  %v3179_v44 = vld [vmem:[%s4801_s0 + $0x218] sm:$0xff]   ;;  %v3180_v45 = vld [vmem:[%s4801_s0 + $0x90] sm:$0xff]  }
   0xf   :  { %2924 = vmatprep.subr.bf16.mxu0 %v3142_v9  ;;  %3131 = vmatprep.subr.bf16.mxu1 %v3142_v9  ;;  %v3181_v46 = vld [vmem:[%s4801_s0 + $0x220] sm:$0xff]   ;;  %v3182_v47 = vld [vmem:[%s4801_s0 + $0x98] sm:$0xff]   ;;  %v3183_v48 = vld [vmem:[%s4801_s0 + $0x228] sm:$0xff]  }
  0x10   :  { %v3184_v49 = vld [vmem:[%s4801_s0 + $0xa0] sm:$0xff]   ;;  %v3185_v50 = vld [vmem:[%s4801_s0 + $0x230] sm:$0xff]   ;;  %v3186_v51 = vld [vmem:[%s4801_s0 + $0xa8] sm:$0xff]  }
  0x11   :  { %v3187_v52 = vld [vmem:[%s4801_s0 + $0x238] sm:$0xff]   ;;  %v3188_v53 = vld [vmem:[%s4801_s0 + $0xb0] sm:$0xff]   ;;  %v3189_v54 = vld [vmem:[%s4801_s0 + $0x240] sm:$0xff]  }
  0x12   :  { %2925 = vmatpush3.bf16.msra.mxu0 %v3142_v9  ;;  %3136 = vmatpush3.bf16.msra.mxu1 %v3142_v9  ;;  %v3190_v55 = vld [vmem:[%s4801_s0 + $0xb8] sm:$0xff]   ;;  %v3191_v56 = vld [vmem:[%s4801_s0 + $0x248] sm:$0xff]   ;;  %v3192_v57 = vld [vmem:[%s4801_s0 + $0xc0] sm:$0xff]  }
  0x13   :  { %2926 = vmatprep.subr.bf16.mxu0 %v3143_v10  ;;  %3132 = vmatprep.subr.bf16.mxu1 %v3143_v10  ;;  %v3193_v58 = vld [vmem:[%s4801_s0 + $0x250] sm:$0xff]   ;;  %v3194_v59 = vld [vmem:[%s4801_s0 + $0xc8] sm:$0xff]   ;;  %v3195_v60 = vld [vmem:[%s4801_s0 + $0x258] sm:$0xff]  }
  0x14   :  { %v3196_v61 = vld [vmem:[%s4801_s0 + $0xd0] sm:$0xff]   ;;  %v3197_v62 = vld [vmem:[%s4801_s0 + $0x260] sm:$0xff]   ;;  %v3198_v63 = vld [vmem:[%s4801_s0 + $0xd8] sm:$0xff]  }
  0x15   :  { %v3199_v0 = vld [vmem:[%s4801_s0 + $0x268] sm:$0xff]   ;;  %v3200_v1 = vld [vmem:[%s4801_s0 + $0xe0] sm:$0xff]   ;;  %v3201_v2 = vld [vmem:[%s4801_s0 + $0x270] sm:$0xff]  }
  0x16   :  { %2927 = vmatpush3.bf16.msra.mxu0 %v3143_v10  ;;  %3137 = vmatpush3.bf16.msra.mxu1 %v3143_v10  ;;  %v3202_v3 = vld [vmem:[%s4801_s0 + $0xe8] sm:$0xff]   ;;  %v3203_v4 = vld [vmem:[%s4801_s0 + $0x278] sm:$0xff]   ;;  %v3204_v5 = vld [vmem:[%s4801_s0 + $0xf0] sm:$0xff]  }
  0x17   :  { %v3205_v6 = vld [vmem:[%s4801_s0 + $0x280] sm:$0xff]   ;;  %v3206_v7 = vld [vmem:[%s4801_s0 + $0xf8] sm:$0xff]   ;;  %v3207_v8 = vld [vmem:[%s4801_s0 + $0x288] sm:$0xff]  }
  0x18   :  { %v3208_v9 = vld [vmem:[%s4801_s0 + $0x100] sm:$0xff]   ;;  %v3209_v10 = vld [vmem:[%s4801_s0 + $0x290] sm:$0xff]  }
  0x19   :  { %2929 = vmatmul.mubr.msk.bf16.vlgmr.msra.gmra.mxu0 %vm761_vm2, %v3146_v11  ;;  %3029 = vmatmul.mubr.msk.bf16.vlgmr.msra.gmra.mxu1 %vm761_vm2, %v3147_v12  ;;  %v3210_v11 = vld [vmem:[%s4801_s0 + $0x108] sm:$0xff]   ;;  %v3211_v12 = vld [vmem:[%s4801_s0 + $0x298] sm:$0xff]  }
  0x1a   :  { %2932 = vmatprep.mubr.msk.bf16.mxu0 %vm761_vm2, %v3148_v13  ;;  %3032 = vmatprep.mubr.msk.bf16.mxu1 %vm761_vm2, %v3149_v14  ;;  %v3212_v13 = vld [vmem:[%s4801_s0 + $0x110] sm:$0xff]   ;;  %v3213_v14 = vld [vmem:[%s4801_s0 + $0x2a0] sm:$0xff]  }
  0x21   :  { %2933 = vmatmul.mubr.msk.bf16.gmra.mxu0 %vm761_vm2, %v3150_v15  ;;  %3033 = vmatmul.mubr.msk.bf16.gmra.mxu1 %vm761_vm2, %v3151_v16  ;;  %v3214_v15 = vld [vmem:[%s4801_s0 + $0x118] sm:$0xff]   ;;  %v3215_v16 = vld [vmem:[%s4801_s0 + $0x2a8] sm:$0xff]  }
  0x22   :  { %2936 = vmatprep.mubr.msk.bf16.mxu0 %vm761_vm2, %v3152_v17  ;;  %3036 = vmatprep.mubr.msk.bf16.mxu1 %vm761_vm2, %v3153_v18  ;;  %v3216_v17 = vld [vmem:[%s4801_s0 + $0x120] sm:$0xff]   ;;  %v3217_v18 = vld [vmem:[%s4801_s0 + $0x2b0] sm:$0xff]  }
  0x29   :  { %2937 = vmatmul.mubr.msk.bf16.gmra.mxu0 %vm761_vm2, %v3154_v19  ;;  %3037 = vmatmul.mubr.msk.bf16.gmra.mxu1 %vm761_vm2, %v3155_v20  ;;  %v3218_v19 = vld [vmem:[%s4801_s0 + $0x128] sm:$0xff]   ;;  %v3219_v20 = vld [vmem:[%s4801_s0 + $0x2b8] sm:$0xff]  }
  0x2a   :  { %2940 = vmatprep.mubr.msk.bf16.mxu0 %vm761_vm2, %v3156_v21  ;;  %3040 = vmatprep.mubr.msk.bf16.mxu1 %vm761_vm2, %v3157_v22  ;;  %v3220_v21 = vld [vmem:[%s4801_s0 + $0x130] sm:$0xff]   ;;  %v3221_v22 = vld [vmem:[%s4801_s0 + $0x2c0] sm:$0xff]  }
  0x31   :  { %2941 = vmatmul.mubr.msk.bf16.gmra.mxu0 %vm761_vm2, %v3158_v23  ;;  %3041 = vmatmul.mubr.msk.bf16.gmra.mxu1 %vm761_vm2, %v3159_v24  ;;  %v3222_v23 = vld [vmem:[%s4801_s0 + $0x138] sm:$0xff]   ;;  %v3223_v24 = vld [vmem:[%s4801_s0 + $0x2c8] sm:$0xff]  }
  0x32   :  { %2944 = vmatprep.mubr.msk.bf16.mxu0 %vm761_vm2, %v3160_v25  ;;  %3044 = vmatprep.mubr.msk.bf16.mxu1 %vm761_vm2, %v3161_v26  ;;  %v3224_v25 = vld [vmem:[%s4801_s0 + $0x140] sm:$0xff]   ;;  %v3225_v26 = vld [vmem:[%s4801_s0 + $0x2d0] sm:$0xff]  }
  0x39   :  { %2945 = vmatmul.mubr.msk.bf16.gmra.mxu0 %vm761_vm2, %v3162_v27  ;;  %3045 = vmatmul.mubr.msk.bf16.gmra.mxu1 %vm761_vm2, %v3163_v28  ;;  %v3226_v27 = vld [vmem:[%s4801_s0 + $0x148] sm:$0xff]   ;;  %v3227_v28 = vld [vmem:[%s4801_s0 + $0x2d8] sm:$0xff]  }
  0x3a   :  { %2948 = vmatprep.mubr.msk.bf16.mxu0 %vm761_vm2, %v3164_v29  ;;  %3048 = vmatprep.mubr.msk.bf16.mxu1 %vm761_vm2, %v3165_v30  ;;  %v3228_v29 = vld [vmem:[%s4801_s0 + $0x150] sm:$0xff]   ;;  %v3229_v30 = vld [vmem:[%s4801_s0 + $0x2e0] sm:$0xff]  }
  0x41   :  { %2949 = vmatmul.mubr.msk.bf16.gmra.mxu0 %vm761_vm2, %v3166_v31  ;;  %3049 = vmatmul.mubr.msk.bf16.gmra.mxu1 %vm761_vm2, %v3167_v32  ;;  %v3230_v31 = vld [vmem:[%s4801_s0 + $0x158] sm:$0xff]   ;;  %v3231_v32 = vld [vmem:[%s4801_s0 + $0x2e8] sm:$0xff]  }
  0x42   :  { %2952 = vmatprep.mubr.msk.bf16.mxu0 %vm761_vm2, %v3168_v33  ;;  %3052 = vmatprep.mubr.msk.bf16.mxu1 %vm761_vm2, %v3169_v34  ;;  %v3232_v33 = vld [vmem:[%s4801_s0 + $0x160] sm:$0xff]   ;;  %v3233_v34 = vld [vmem:[%s4801_s0 + $0x2f0] sm:$0xff]  }
  0x49   :  { %2953 = vmatmul.mubr.msk.bf16.gmra.mxu0 %vm761_vm2, %v3170_v35  ;;  %3053 = vmatmul.mubr.msk.bf16.gmra.mxu1 %vm761_vm2, %v3171_v36  ;;  %v3234_v35 = vld [vmem:[%s4801_s0 + $0x168] sm:$0xff]   ;;  %v3235_v36 = vld [vmem:[%s4801_s0 + $0x2f8] sm:$0xff]  }
  0x4a   :  { %2956 = vmatprep.mubr.msk.bf16.mxu0 %vm761_vm2, %v3172_v37  ;;  %3056 = vmatprep.mubr.msk.bf16.mxu1 %vm761_vm2, %v3173_v38  ;;  %v3236_v37 = vld [vmem:[%s4801_s0 + $0x170] sm:$0xff]   ;;  %v3237_v38 = vld [vmem:[%s4801_s0 + $0x300] sm:$0xff]  }
  0x51   :  { %2957 = vmatmul.mubr.msk.bf16.gmra.mxu0 %vm761_vm2, %v3174_v39  ;;  %3057 = vmatmul.mubr.msk.bf16.gmra.mxu1 %vm761_vm2, %v3175_v40  ;;  %v3238_v39 = vld [vmem:[%s4801_s0 + $0x178] sm:$0xff]   ;;  %v3239_v40 = vld [vmem:[%s4801_s0 + $0x308] sm:$0xff]  }
  0x52   :  { %2960 = vmatprep.mubr.msk.bf16.mxu0 %vm761_vm2, %v3176_v41  ;;  %3060 = vmatprep.mubr.msk.bf16.mxu1 %vm761_vm2, %v3177_v42  ;;  %v3240_v41 = vld [vmem:[%s4801_s0 + $0x180] sm:$0xff]   ;;  %v3241_v42 = vld [vmem:[%s4801_s0 + $0x310] sm:$0xff]  }
  0x59   :  { %2961 = vmatmul.mubr.msk.bf16.gmra.mxu0 %vm761_vm2, %v3178_v43  ;;  %3061 = vmatmul.mubr.msk.bf16.gmra.mxu1 %vm761_vm2, %v3179_v44  ;;  %v3242_v43 = vld [vmem:[%s4801_s0 + $0x188] sm:$0xff]   ;;  %v3243_v44 = vld [vmem:[%s4801_s0 + $0x318] sm:$0xff]  }
  0x5a   :  { %2964 = vmatprep.mubr.msk.bf16.mxu0 %vm761_vm2, %v3180_v45  ;;  %3064 = vmatprep.mubr.msk.bf16.mxu1 %vm761_vm2, %v3181_v46 }
  0x61   :  { %2965 = vmatmul.mubr.msk.bf16.gmra.mxu0 %vm761_vm2, %v3182_v47  ;;  %3065 = vmatmul.mubr.msk.bf16.gmra.mxu1 %vm761_vm2, %v3183_v48 }
  0x62   :  { %2968 = vmatprep.mubr.msk.bf16.mxu0 %vm761_vm2, %v3184_v49  ;;  %3068 = vmatprep.mubr.msk.bf16.mxu1 %vm761_vm2, %v3185_v50 }
  0x69   :  { %2969 = vmatmul.mubr.msk.bf16.gmra.mxu0 %vm761_vm2, %v3186_v51  ;;  %3069 = vmatmul.mubr.msk.bf16.gmra.mxu1 %vm761_vm2, %v3187_v52 }
  0x6a   :  { %2972 = vmatprep.mubr.msk.bf16.mxu0 %vm761_vm2, %v3188_v53  ;;  %3072 = vmatprep.mubr.msk.bf16.mxu1 %vm761_vm2, %v3189_v54 }
  0x71   :  { %2973 = vmatmul.mubr.msk.bf16.gmra.mxu0 %vm761_vm2, %v3190_v55  ;;  %3073 = vmatmul.mubr.msk.bf16.gmra.mxu1 %vm761_vm2, %v3191_v56 }
  0x72   :  { %2976 = vmatprep.mubr.msk.bf16.mxu0 %vm761_vm2, %v3192_v57  ;;  %3076 = vmatprep.mubr.msk.bf16.mxu1 %vm761_vm2, %v3193_v58 }
  0x79   :  { %2977 = vmatmul.mubr.msk.bf16.gmra.mxu0 %vm761_vm2, %v3194_v59  ;;  %3077 = vmatmul.mubr.msk.bf16.gmra.mxu1 %vm761_vm2, %v3195_v60 }
  0x7a   :  { %2980 = vmatprep.mubr.msk.bf16.mxu0 %vm761_vm2, %v3196_v61  ;;  %3080 = vmatprep.mubr.msk.bf16.mxu1 %vm761_vm2, %v3197_v62 }
  0x81   :  { %2981 = vmatmul.mubr.msk.bf16.gmra.mxu0 %vm761_vm2, %v3198_v63  ;;  %3081 = vmatmul.mubr.msk.bf16.gmra.mxu1 %vm761_vm2, %v3199_v0 }
  0x82   :  { %2984 = vmatprep.mubr.msk.bf16.mxu0 %vm761_vm2, %v3200_v1  ;;  %3084 = vmatprep.mubr.msk.bf16.mxu1 %vm761_vm2, %v3201_v2 }
  0x89   :  { %2985 = vmatmul.mubr.msk.bf16.gmra.mxu0 %vm761_vm2, %v3202_v3  ;;  %3085 = vmatmul.mubr.msk.bf16.gmra.mxu1 %vm761_vm2, %v3203_v4 }
  0x8a   :  { %2988 = vmatprep.mubr.msk.bf16.mxu0 %vm761_vm2, %v3204_v5  ;;  %3088 = vmatprep.mubr.msk.bf16.mxu1 %vm761_vm2, %v3205_v6 }
  0x91   :  { %2989 = vmatmul.mubr.msk.bf16.gmra.mxu0 %vm761_vm2, %v3206_v7  ;;  %3089 = vmatmul.mubr.msk.bf16.gmra.mxu1 %vm761_vm2, %v3207_v8 }
  0x92   :  { %2992 = vmatprep.mubr.msk.bf16.mxu0 %vm761_vm2, %v3208_v9  ;;  %3092 = vmatprep.mubr.msk.bf16.mxu1 %vm761_vm2, %v3209_v10 }
  0x99   :  { %2993 = vmatmul.mubr.msk.bf16.gmra.mxu0 %vm761_vm2, %v3210_v11  ;;  %3093 = vmatmul.mubr.msk.bf16.gmra.mxu1 %vm761_vm2, %v3211_v12 }
  0x9a   :  { %2996 = vmatprep.mubr.msk.bf16.mxu0 %vm761_vm2, %v3212_v13  ;;  %3096 = vmatprep.mubr.msk.bf16.mxu1 %vm761_vm2, %v3213_v14 }
  0xa1   :  { %2997 = vmatmul.mubr.msk.bf16.gmra.mxu0 %vm761_vm2, %v3214_v15  ;;  %3097 = vmatmul.mubr.msk.bf16.gmra.mxu1 %vm761_vm2, %v3215_v16 }
  0xa2   :  { %3000 = vmatprep.mubr.msk.bf16.mxu0 %vm761_vm2, %v3216_v17  ;;  %3100 = vmatprep.mubr.msk.bf16.mxu1 %vm761_vm2, %v3217_v18 }
  0xa9   :  { %3001 = vmatmul.mubr.msk.bf16.gmra.mxu0 %vm761_vm2, %v3218_v19  ;;  %3101 = vmatmul.mubr.msk.bf16.gmra.mxu1 %vm761_vm2, %v3219_v20 }
  0xaa   :  { %3004 = vmatprep.mubr.msk.bf16.mxu0 %vm761_vm2, %v3220_v21  ;;  %3104 = vmatprep.mubr.msk.bf16.mxu1 %vm761_vm2, %v3221_v22 }
  0xb1   :  { %3005 = vmatmul.mubr.msk.bf16.gmra.mxu0 %vm761_vm2, %v3222_v23  ;;  %3105 = vmatmul.mubr.msk.bf16.gmra.mxu1 %vm761_vm2, %v3223_v24 }
  0xb2   :  { %3008 = vmatprep.mubr.msk.bf16.mxu0 %vm761_vm2, %v3224_v25  ;;  %3108 = vmatprep.mubr.msk.bf16.mxu1 %vm761_vm2, %v3225_v26 }
  0xb9   :  { %3009 = vmatmul.mubr.msk.bf16.gmra.mxu0 %vm761_vm2, %v3226_v27  ;;  %3109 = vmatmul.mubr.msk.bf16.gmra.mxu1 %vm761_vm2, %v3227_v28 }
  0xba   :  { %3012 = vmatprep.mubr.msk.bf16.mxu0 %vm761_vm2, %v3228_v29  ;;  %3112 = vmatprep.mubr.msk.bf16.mxu1 %vm761_vm2, %v3229_v30 }
  0xc1   :  { %3013 = vmatmul.mubr.msk.bf16.gmra.mxu0 %vm761_vm2, %v3230_v31  ;;  %3113 = vmatmul.mubr.msk.bf16.gmra.mxu1 %vm761_vm2, %v3231_v32  ;;  %v3762_v31 = vld [vmem:[%s4802_s2] ss:$0 sm:$0xff] }
  0xc2   :  { %3016 = vmatprep.mubr.msk.bf16.mxu0 %vm761_vm2, %v3232_v33  ;;  %3116 = vmatprep.mubr.msk.bf16.mxu1 %vm761_vm2, %v3233_v34 }
  0xc9   :  { %3017 = vmatmul.mubr.msk.bf16.gmra.mxu0 %vm761_vm2, %v3234_v35  ;;  %3117 = vmatmul.mubr.msk.bf16.gmra.mxu1 %vm761_vm2, %v3235_v36 }
  0xca   :  { %3020 = vmatprep.mubr.msk.bf16.mxu0 %vm761_vm2, %v3236_v37  ;;  %3120 = vmatprep.mubr.msk.bf16.mxu1 %vm761_vm2, %v3237_v38 }
  0xd1   :  { %3021 = vmatmul.mubr.msk.bf16.gmra.mxu0 %vm761_vm2, %v3238_v39  ;;  %3121 = vmatmul.mubr.msk.bf16.gmra.mxu1 %vm761_vm2, %v3239_v40 }
  0xd2   :  { %3024 = vmatprep.mubr.msk.bf16.mxu0 %vm761_vm2, %v3240_v41  ;;  %3124 = vmatprep.mubr.msk.bf16.mxu1 %vm761_vm2, %v3241_v42 }
  0xd9   :  { %v2930_v45 = vpop.f32.mrf.mxu0  ;;  %3025 = vmatmul.mubr.msk.bf16.gmra.mxu0 %vm761_vm2, %v3242_v43  ;;  %v3030_v46 = vpop.f32.mrf.mxu1  ;;  %3125 = vmatmul.mubr.msk.bf16.gmra.mxu1 %vm761_vm2, %v3243_v44 }
  0xda   :  { %v3773_v36 = vadd.f32 %v2930_v45, %v3762_v31  ;;  %v3776_v37 = vadd.f32 %v3030_v46, %v3762_v31 }
  0xdb   :  { %v1103_v47 = vpop.f32.mrf.mxu0  ;;  %v1503_v48 = vpop.f32.mrf.mxu1 }
  0xdc   :  { %4858 = vst [vmem:[#allocation2_spill] sm:$0xff] %v3773_v36  ;;  %4859 = vst [vmem:[#allocation3_spill] sm:$0xff] %v3776_v37  ;;  %v3779_v38 = vadd.f32 %v3762_v31, %v1103_v47  ;;  %v3782_v39 = vadd.f32 %v3762_v31, %v1503_v48 }
  0xdd   :  { %v2931_v49 = vpop.f32.mrf.mxu0  ;;  %v3031_v50 = vpop.f32.mrf.mxu1 }
  0xde   :  { %v3789_v42 = vadd.f32 %v2931_v49, %v3762_v31  ;;  %v3792_v43 = vadd.f32 %v3031_v50, %v3762_v31 }
  0xdf   :  { %v1106_v51 = vpop.f32.mrf.mxu0  ;;  %v1506_v52 = vpop.f32.mrf.mxu1 }
  0xe0   :  { %4862 = vst [vmem:[#allocation6_spill] sm:$0xff] %v3789_v42  ;;  %v3795_v44 = vadd.f32 %v3762_v31, %v1106_v51  ;;  %v3798_v45 = vadd.f32 %v3762_v31, %v1506_v52 }
  0xe1   :  { %v2934_v53 = vpop.f32.mrf.mxu0  ;;  %v3034_v54 = vpop.f32.mrf.mxu1 }
  0xe2   :  { %v3801_v46 = vadd.f32 %v2934_v53, %v3762_v31  ;;  %v3810_v50 = vadd.f32 %v3034_v54, %v3762_v31 }
  0xe3   :  { %v1119_v55 = vpop.f32.mrf.mxu0  ;;  %v3681_v56 = vpop.f32.mrf.mxu1 }
  0xe4   :  { %4863 = vst [vmem:[#allocation7_spill] sm:$0xff] %v3801_v46  ;;  %4865 = vst [vmem:[#allocation9_spill] sm:$0xff] %v3810_v50  ;;  %v3813_v51 = vadd.f32 %v3762_v31, %v1119_v55  ;;  %v3819_v53 = vadd.f32 %v3762_v31, %v3681_v56 }
  0xe5   :  { %v3683_v57 = vpop.f32.mrf.mxu0  ;;  %v3685_v58 = vpop.f32.mrf.mxu1 }
  0xe6   :  { %v3832_v55 = vadd.f32 %v3685_v58, %v3762_v31 }
  0xe7   :  { %v3687_v59 = vpop.f32.mrf.mxu0  ;;  %v3689_v60 = vpop.f32.mrf.mxu1 }
  0xe8   :  { %4867 = vst [vmem:[#allocation11_spill] sm:$0xff] %v3832_v55  ;;  %v3840_v56 = vadd.f32 %v3762_v31, %v3689_v60 }
  0xe9   :  { %v3691_v61 = vpop.f32.mrf.mxu0  ;;  %v3693_v62 = vpop.f32.mrf.mxu1 }
  0xea   :  { %v3854_v60 = vadd.f32 %v3691_v61, %v3762_v31 }
  0xeb   :  { %v3695_v63 = vpop.f32.mrf.mxu0  ;;  %v3697_v0 = vpop.f32.mrf.mxu1 }
  0xec   :  { %4868 = vst [vmem:[#allocation12_spill] sm:$0xff] %v3854_v60  ;;  %v3864_v52 = vadd.f32 %v3762_v31, %v3695_v63  ;;  %v3868_v36 = vadd.f32 %v3762_v31, %v3697_v0 }
  0xed   :  { %v3699_v1 = vpop.f32.mrf.mxu0  ;;  %v3701_v2 = vpop.f32.mrf.mxu1 }
  0xee   :  { %4870 = vst [vmem:[#allocation14_spill] sm:$0xff] %v3868_v36  ;;  %v3879_v54 = vadd.f32 %v3699_v1, %v3762_v31  ;;  %v3883_v63 = vadd.f32 %v3701_v2, %v3762_v31 }
  0xef   :  { %v3703_v3 = vpop.f32.mrf.mxu0  ;;  %v3705_v4 = vpop.f32.mrf.mxu1 }
  0xf0   :  { %4871 = vst [vmem:[#allocation15_spill] sm:$0xff] %v3879_v54  ;;  %v3887_v0 = vadd.f32 %v3762_v31, %v3703_v3 }
  0xf1   :  { %v3707_v5 = vpop.f32.mrf.mxu0  ;;  %v3709_v6 = vpop.f32.mrf.mxu1 }
  0xf2   :  { %v3895_v50 = vadd.f32 %v3707_v5, %v3762_v31  ;;  %v3905_v3 = vadd.f32 %v3709_v6, %v3762_v31 }
  0xf3   :  { %v3711_v7 = vpop.f32.mrf.mxu0  ;;  %v3713_v8 = vpop.f32.mrf.mxu1 }
  0xf4   :  { %4872 = vst [vmem:[#allocation16_spill] sm:$0xff] %v3895_v50  ;;  %4873 = vst [vmem:[#allocation17_spill] sm:$0xff] %v3905_v3  ;;  %v3915_v46 = vadd.f32 %v3762_v31, %v3713_v8 }
  0xf5   :  { %v3715_v9 = vpop.f32.mrf.mxu0  ;;  %v3717_v10 = vpop.f32.mrf.mxu1 }
  0xf7   :  { %v3719_v11 = vpop.f32.mrf.mxu0  ;;  %v3721_v12 = vpop.f32.mrf.mxu1 }
  0xf8   :  { %v3932_v5 = vadd.f32 %v3762_v31, %v3719_v11  ;;  %v3936_v8 = vadd.f32 %v3762_v31, %v3721_v12 }
  0xf9   :  { %v3723_v13 = vpop.f32.mrf.mxu0  ;;  %v3725_v14 = vpop.f32.mrf.mxu1 }
  0xfa   :  { %v3950_v12 = vadd.f32 %v3723_v13, %v3762_v31 }
  0xfb   :  { %v3727_v15 = vpop.f32.mrf.mxu0  ;;  %v3729_v16 = vpop.f32.mrf.mxu1 }
  0xfc   :  { %4876 = vst [vmem:[#allocation20_spill] sm:$0xff] %v3950_v12  ;;  %v3960_v55 = vadd.f32 %v3762_v31, %v3727_v15  ;;  %v3964_v36 = vadd.f32 %v3762_v31, %v3729_v16 }
  0xfd   :  { %v3731_v17 = vpop.f32.mrf.mxu0  ;;  %v3733_v18 = vpop.f32.mrf.mxu1 }
  0xfe   :  { %4878 = vst [vmem:[#allocation22_spill] sm:$0xff] %v3964_v36  ;;  %v3979_v15 = vadd.f32 %v3733_v18, %v3762_v31 }
  0xff   :  { %v3735_v19 = vpop.f32.mrf.mxu0  ;;  %v3737_v20 = vpop.f32.mrf.mxu1 }
 0x100   :  { %4880 = vst [vmem:[#allocation24_spill] sm:$0xff] %v3979_v15  ;;  %v3983_v16 = vadd.f32 %v3762_v31, %v3735_v19 }
 0x101   :  { %v3739_v21 = vpop.f32.mrf.mxu0  ;;  %v3741_v22 = vpop.f32.mrf.mxu1 }
 0x102   :  { %v3991_v3 = vadd.f32 %v3739_v21, %v3762_v31  ;;  %v4001_v19 = vadd.f32 %v3741_v22, %v3762_v31 }
 0x103   :  { %v3743_v23 = vpop.f32.mrf.mxu0  ;;  %v3745_v24 = vpop.f32.mrf.mxu1 }
 0x104   :  { %4881 = vst [vmem:[#allocation25_spill] sm:$0xff] %v3991_v3  ;;  %4882 = vst [vmem:[#allocation26_spill] sm:$0xff] %v4001_v19  ;;  %v4011_v50 = vadd.f32 %v3762_v31, %v3745_v24 }
 0x105   :  { %v3747_v25 = vpop.f32.mrf.mxu0  ;;  %v3749_v26 = vpop.f32.mrf.mxu1 }
 0x107   :  { %v3751_v27 = vpop.f32.mrf.mxu0  ;;  %v3753_v28 = vpop.f32.mrf.mxu1 }
 0x108   :  { %v4028_v21 = vadd.f32 %v3762_v31, %v3751_v27  ;;  %v4032_v24 = vadd.f32 %v3762_v31, %v3753_v28 }
 0x109   :  { %v3755_v29 = vpop.f32.mrf.mxu0  ;;  %v3757_v30 = vpop.f32.mrf.mxu1 }
 0x10a   :  { %4885 = vst [vmem:[#allocation29_spill] sm:$0xff] %v4028_v21  ;;  %4886 = vst [vmem:[#allocation30_spill] sm:$0xff] %v4032_v24  ;;  %v4046_v28 = vadd.f32 %v3755_v29, %v3762_v31 }
 0x10b   :  { %v3764_v32 = vpop.f32.mrf.mxu0  ;;  %v3766_v33 = vpop.f32.mrf.mxu1 }
 0x10c   :  { %4887 = vst [vmem:[#allocation31_spill] sm:$0xff] %v4046_v28  ;;  %v4060_v36 = vadd.f32 %v3762_v31, %v3766_v33 }
 0x10d   :  { %v3768_v34 = vpop.f32.mrf.mxu0  ;;  %v3770_v35 = vpop.f32.mrf.mxu1 }
 0x10e   :  { %4890 = vst [vmem:[#allocation34_spill] sm:$0xff] %v4060_v36 }
 0x10f   :  { %v3784_v40 = vpop.f32.mrf.mxu0  ;;  %v3786_v41 = vpop.f32.mrf.mxu1 }
 0x110   :  { %4860 = vst [vmem:[#allocation4_spill] sm:$0xff] %v3784_v40  ;;  %4861 = vst [vmem:[#allocation5_spill] sm:$0xff] %v3786_v41  ;;  %v3836_v40 = vadd.f32 %v3762_v31, %v3687_v59 }
 0x111   :  { %v3803_v47 = vpop.f32.mrf.mxu0  ;;  %v3805_v48 = vpop.f32.mrf.mxu1 }
 0x112   :  { %4864 = vst [vmem:[#allocation8_spill] sm:$0xff] %v3805_v48  ;;  %v3823_v48 = vadd.f32 %v3683_v57, %v3762_v31  ;;  %v3858_v57 = vadd.f32 %v3693_v62, %v3762_v31  ;;  %v3919_v62 = vadd.f32 %v3715_v9, %v3762_v31  ;;  %v3954_v9 = vadd.f32 %v3725_v14, %v3762_v31 }
 0x113   :  { %v3825_v41 = vpop.f32.mrf.mxu0  ;;  %v3827_v49 = vpop.f32.mrf.mxu1  ;;  %v4015_v14 = vadd.f32 %v3747_v25, %v3762_v31  ;;  %v4050_v25 = vadd.f32 %v3757_v30, %v3762_v31  ;;  %v4087_v19 = vadd.f32 %v3803_v47, %v3762_v31 }
 0x114   :  { %4866 = vst [vmem:[#allocation10_spill] sm:$0xff] %v3823_v48  ;;  %4869 = vst [vmem:[#allocation13_spill] sm:$0xff] %v3858_v57  ;;  %v3891_v48 = vadd.f32 %v3762_v31, %v3705_v4  ;;  %v3909_v4 = vadd.f32 %v3762_v31, %v3711_v7  ;;  %v3928_v7 = vadd.f32 %v3717_v10, %v3762_v31 }
 0x115   :  { %v3846_v42 = vpop.f32.mrf.mxu0  ;;  %v3848_v58 = vpop.f32.mrf.mxu1  ;;  %4874 = vst [vmem:[#allocation18_spill] sm:$0xff] %v3919_v62  ;;  %4877 = vst [vmem:[#allocation21_spill] sm:$0xff] %v3954_v9  ;;  %v3975_v57 = vadd.f32 %v3731_v17, %v3762_v31  ;;  %v3987_v62 = vadd.f32 %v3762_v31, %v3737_v20  ;;  %v4005_v20 = vadd.f32 %v3762_v31, %v3743_v23 }
 0x116   :  { %4875 = vst [vmem:[#allocation19_spill] sm:$0xff] %v3928_v7  ;;  %4883 = vst [vmem:[#allocation27_spill] sm:$0xff] %v4015_v14  ;;  %v4024_v23 = vadd.f32 %v3749_v26, %v3762_v31  ;;  %v4056_v7 = vadd.f32 %v3762_v31, %v3764_v32  ;;  %v4071_v9 = vadd.f32 %v3768_v34, %v3762_v31 }
 0x117   :  { %v3870_v59 = vpop.f32.mrf.mxu0  ;;  %v3872_v61 = vpop.f32.mrf.mxu1  ;;  %4879 = vst [vmem:[#allocation23_spill] sm:$0xff] %v3975_v57  ;;  %4888 = vst [vmem:[#allocation32_spill] sm:$0xff] %v4050_v25  ;;  %v4075_v32 = vadd.f32 %v3770_v35, %v3762_v31  ;;  %v4892_v33 = vld [vmem:[#allocation4_spill] sm:$0xff]  ;;  %v4893_v3 = vld [vmem:[#allocation5_spill] sm:$0xff]  ;;  %v4107_v21 = vadd.f32 %v3762_v31, %v3827_v49  ;;  %v4111_v30 = vadd.f32 %v3846_v42, %v3762_v31 }
 0x118   :  { %4884 = vst [vmem:[#allocation28_spill] sm:$0xff] %v4024_v23  ;;  %4889 = vst [vmem:[#allocation33_spill] sm:$0xff] %v4056_v7  ;;  %v4079_v14 = vadd.f32 %v3762_v31, %v4892_v33  ;;  %v4083_v15 = vadd.f32 %v3762_v31, %v4893_v3  ;;  %v4101_v3 = vadd.f32 %v3762_v31, %v3825_v41 }
 0x119   :  { %v3897_v37 = vpop.f32.mrf.mxu0  ;;  %v3899_v1 = vpop.f32.mrf.mxu1  ;;  %4891 = vst [vmem:[#allocation35_spill] sm:$0xff] %v4071_v9  ;;  %4894 = vst [vmem:[#allocation4_spill] sm:$0xff] %v4087_v19  ;;  %v4895_v23 = vld [vmem:[#allocation8_spill] sm:$0xff]  ;;  %v4116_v41 = vadd.f32 %v3848_v58, %v3762_v31  ;;  %v4120_v24 = vadd.f32 %v3762_v31, %v3870_v59  ;;  %v4124_v49 = vadd.f32 %v3762_v31, %v3872_v61 }
 0x11a   :  { %v4097_v33 = vadd.f32 %v4895_v23, %v3762_v31  ;;  %4897 = vst [vmem:[#allocation8_spill] sm:$0xff] %v4111_v30  ;;  %v4134_v59 = vadd.f32 %v3897_v37, %v3762_v31  ;;  %v4138_v61 = vadd.f32 %v3899_v1, %v3762_v31 }
 0x11b   :  { %v3921_v2 = vpop.f32.mrf.mxu0  ;;  %v3923_v6 = vpop.f32.mrf.mxu1  ;;  %4898 = vst [vmem:[#allocation36_spill] sm:$0xff] %v4116_v41 }
 0x11c   :  { %4896 = vst [vmem:[#allocation5_spill] sm:$0xff] %v4097_v33  ;;  %4899 = vst [vmem:[#allocation37_spill] sm:$0xff] %v4134_v59  ;;  %v4144_v23 = vadd.f32 %v3762_v31, %v3921_v2  ;;  %v4148_v58 = vadd.f32 %v3762_v31, %v3923_v6 }
 0x11d   :  { %v3942_v54 = vpop.f32.mrf.mxu0  ;;  %v3944_v10 = vpop.f32.mrf.mxu1  ;;  %4900 = vst [vmem:[#allocation38_spill] sm:$0xff] %v4138_v61 }
 0x11e   :  { %4901 = vst [vmem:[#allocation39_spill] sm:$0xff] %v4148_v58  ;;  %v4155_v47 = vadd.f32 %v3942_v54, %v3762_v31  ;;  %v4159_v2 = vadd.f32 %v3944_v10, %v3762_v31 }
 0x11f   :  { %v3966_v11 = vpop.f32.mrf.mxu0  ;;  %v3968_v13 = vpop.f32.mrf.mxu1 }
 0x120   :  { %4902 = vst [vmem:[#allocation40_spill] sm:$0xff] %v4155_v47  ;;  %4903 = vst [vmem:[#allocation41_spill] sm:$0xff] %v4159_v2  ;;  %v4163_v6 = vadd.f32 %v3762_v31, %v3966_v11  ;;  %v4167_v28 = vadd.f32 %v3762_v31, %v3968_v13 }
 0x121   :  { %v3993_v60 = vpop.f32.mrf.mxu0  ;;  %v3995_v17 = vpop.f32.mrf.mxu1 }
 0x122   :  { %v4171_v37 = vadd.f32 %v3993_v60, %v3762_v31  ;;  %v4177_v10 = vadd.f32 %v3995_v17, %v3762_v31 }
 0x123   :  { %v4017_v18 = vpop.f32.mrf.mxu0  ;;  %v4019_v22 = vpop.f32.mrf.mxu1 }
 0x124   :  { %4904 = vst [vmem:[#allocation42_spill] sm:$0xff] %v4171_v37  ;;  %4905 = vst [vmem:[#allocation43_spill] sm:$0xff] %v4177_v10  ;;  %v4181_v11 = vadd.f32 %v3762_v31, %v4017_v18  ;;  %v4187_v60 = vadd.f32 %v3762_v31, %v4019_v22 }
 0x125   :  { %v4038_v57 = vpop.f32.mrf.mxu0  ;;  %v4040_v26 = vpop.f32.mrf.mxu1 }
 0x126   :  { %v4191_v54 = vadd.f32 %v4038_v57, %v3762_v31  ;;  %v4196_v18 = vadd.f32 %v4040_v26, %v3762_v31 }
 0x127   :  { %v4062_v27 = vpop.f32.mrf.mxu0  ;;  %v4064_v29 = vpop.f32.mrf.mxu1 }
 0x128   :  { %4906 = vst [vmem:[#allocation44_spill] sm:$0xff] %v4191_v54  ;;  %4907 = vst [vmem:[#allocation45_spill] sm:$0xff] %v4196_v18  ;;  %v4200_v13 = vadd.f32 %v3762_v31, %v4062_v27  ;;  %v4204_v22 = vadd.f32 %v3762_v31, %v4064_v29 }
 0x129   :  { %v4089_v12 = vpop.f32.mrf.mxu0  ;;  %v4091_v34 = vpop.f32.mrf.mxu1 }
 0x12a   :  { %4908 = vst [vmem:[#allocation46_spill] sm:$0xff] %v4204_v22  ;;  %v4214_v27 = vadd.f32 %v4089_v12, %v3762_v31  ;;  %v4218_v29 = vadd.f32 %v4091_v34, %v3762_v31 }
 0x12b   :  { %v1263_v35 = vpop.f32.mrf.mxu0  ;;  %v1663_v25 = vpop.f32.mrf.mxu1 }
 0x12c   :  { %4909 = vst [vmem:[#allocation47_spill] sm:$0xff] %v4214_v27  ;;  %4910 = vst [vmem:[#allocation48_spill] sm:$0xff] %v4218_v29  ;;  %v4223_v17 = vadd.f32 %v3762_v31, %v1263_v35  ;;  %v4226_v57 = vadd.f32 %v3762_v31, %v1663_v25 }
 0x12d   :  { %v2971_v9 = vpop.f32.mrf.mxu0  ;;  %v3071_v36 = vpop.f32.mrf.mxu1 }
 0x12e   :  { %4911 = vst [vmem:[#allocation49_spill] sm:$0xff] %v4226_v57  ;;  %v4232_v34 = vadd.f32 %v2971_v9, %v3762_v31  ;;  %v4235_v30 = vadd.f32 %v3071_v36, %v3762_v31 }
 0x12f   :  { %v1266_v7 = vpop.f32.mrf.mxu0  ;;  %v1666_v42 = vpop.f32.mrf.mxu1 }
 0x130   :  { %4912 = vst [vmem:[#allocation50_spill] sm:$0xff] %v4232_v34  ;;  %4913 = vst [vmem:[#allocation51_spill] sm:$0xff] %v4235_v30  ;;  %v4238_v35 = vadd.f32 %v3762_v31, %v1266_v7  ;;  %v4241_v25 = vadd.f32 %v3762_v31, %v1666_v42  ;;  %v4924_v34 = vmax.f32 %v3813_v51, 0.0 }
 0x131   :  { %v2974_v1 = vpop.f32.mrf.mxu0  ;;  %v3074_v33 = vpop.f32.mrf.mxu1 }
 0x132   :  { %v4244_v59 = vadd.f32 %v2974_v1, %v3762_v31  ;;  %v4253_v42 = vadd.f32 %v3074_v33, %v3762_v31 }
 0x133   :  { %v1279_v41 = vpop.f32.mrf.mxu0  ;;  %v1679_v61 = vpop.f32.mrf.mxu1 }
 0x134   :  { %4914 = vst [vmem:[#allocation52_spill] sm:$0xff] %v4244_v59  ;;  %4915 = vst [vmem:[#allocation53_spill] sm:$0xff] %v4253_v42  ;;  %v4256_v1 = vadd.f32 %v3762_v31, %v1279_v41  ;;  %v4260_v9 = vadd.f32 %v3762_v31, %v1679_v61  ;;  %v4916_v61 = vmax.f32 %v3779_v38, 0.0 }
 0x135   :  { %v2975_v47 = vpop.f32.mrf.mxu0  ;;  %v3075_v19 = vpop.f32.mrf.mxu1 }
 0x137   :  { %v1282_v26 = vpop.f32.mrf.mxu0  ;;  %v1682_v58 = vpop.f32.mrf.mxu1 }
 0x138   :  { %v4267_v57 = vadd.f32 %v3762_v31, %v1282_v26  ;;  %v4270_v37 = vadd.f32 %v3762_v31, %v1682_v58  ;;  %v4282_v58 = vadd.f32 %v2975_v47, %v3762_v31 }
 0x139   :  { %v2978_v10 = vpop.f32.mrf.mxu0  ;;  %v3078_v18 = vpop.f32.mrf.mxu1 }
 0x13a   :  { %v1304_v12 = vadd.f32 %v2978_v10, %v3762_v31  ;;  %v1704_v36 = vadd.f32 %v3078_v18, %v3762_v31  ;;  %4918 = vst [vmem:[#allocation54_spill] sm:$0xff] %v4282_v58 }
 0x13b   :  { %v1295_v2 = vpop.f32.mrf.mxu0  ;;  %v1695_v22 = vpop.f32.mrf.mxu1 }
 0x13c   :  { %v1952_v10 = vmax.f32 %v1304_v12, 0.0  ;;  %v2052_v29 = vmax.f32 %v1704_v36, 0.0  ;;  %v4917_v36 = vmax.f32 %v3782_v39, 0.0  ;;  %v4288_v39 = vadd.f32 %v3075_v19, %v3762_v31 }
 0x13d   :  { %v2979_v27 = vpop.f32.mrf.mxu0  ;;  %v3079_v41 = vpop.f32.mrf.mxu1  ;;  %v4923_v19 = vmax.f32 %v3798_v45, 0.0 }
 0x13e   :  { %v2102_v12 = vmax.f32 %v4916_v61, %v1952_v10  ;;  %v2152_v18 = vmax.f32 %v4917_v36, %v2052_v29  ;;  %v1307_v33 = vadd.f32 %v2979_v27, %v3762_v31  ;;  %v1707_v59 = vadd.f32 %v3079_v41, %v3762_v31  ;;  %4920 = vst [vmem:[#allocation56_spill] sm:$0xff] %v4288_v39 }
 0x13f   :  { %v1298_v30 = vpop.f32.mrf.mxu0  ;;  %v1698_v26 = vpop.f32.mrf.mxu1  ;;  %v4285_v10 = vadd.f32 %v3762_v31, %v1295_v2  ;;  %v4291_v29 = vadd.f32 %v3762_v31, %v1695_v22  ;;  %v4922_v2 = vmax.f32 %v3795_v44, 0.0 }
 0x140   :  { %v2202_v38 = vmax.f32 %v2102_v12, %v2152_v18  ;;  %v1953_v27 = vmax.f32 %v1307_v33, 0.0  ;;  %v2053_v61 = vmax.f32 %v1707_v59, 0.0  ;;  %v4301_v22 = vadd.f32 %v3762_v31, %v1298_v30 }
 0x141   :  { %4919 = vst [vmem:[#allocation55_spill] sm:$0xff] %v4285_v10  ;;  %4921 = vst [vmem:[#allocation57_spill] sm:$0xff] %v4291_v29  ;;  %v2982_v41 = vpop.f32.mrf.mxu0  ;;  %v3082_v36 = vpop.f32.mrf.mxu1  ;;  %v4928_v10 = vld [vmem:[#allocation3_spill] sm:$0xff] }
 0x142   :  { %v2763_v47 = vpack.c.bf16 %v2202_v38, %v2202_v38  ;;  %v1320_v18 = vadd.f32 %v2982_v41, %v3762_v31  ;;  %v2103_v12 = vmax.f32 %v4922_v2, %v1953_v27  ;;  %v2153_v54 = vmax.f32 %v4923_v19, %v2053_v61 }
 0x143   :  { %v1720_v59 = vadd.f32 %v3082_v36, %v3762_v31  ;;  %v1311_v33 = vpop.f32.mrf.mxu0  ;;  %v1711_v39 = vpop.f32.mrf.mxu1  ;;  %v4313_v61 = vadd.f32 %v3762_v31, %v1698_v26  ;;  %v4929_v51 = vmax.f32 %v4928_v10, 0.0  ;;  %v4930_v10 = vmax.f32 %v3836_v40, 0.0 }
 0x144   :  { %2453 = vst.msk [vmem:[%s4803_s3] sm:$0xf] %vm2452_vm3, %v2763_v47  ;;  %v1956_v41 = vmax.f32 %v1320_v18, 0.0  ;;  %v1312_v44 = vadd.f32 %v3762_v31, %v1311_v33  ;;  %v1712_v45 = vadd.f32 %v3762_v31, %v1711_v39  ;;  %v2203_v30 = vmax.f32 %v2103_v12, %v2153_v54 }
 0x145   :  { %v2056_v36 = vmax.f32 %v1720_v59, 0.0  ;;  %v2983_v2 = vpop.f32.mrf.mxu0  ;;  %v3083_v19 = vpop.f32.mrf.mxu1  ;;  %v4925_v39 = vmax.f32 %v3819_v53, 0.0  ;;  %v4926_v59 = vld [vmem:[#allocation2_spill] sm:$0xff] }
 0x146   :  { %v2106_v7 = vmax.f32 %v4924_v34, %v1956_v41  ;;  %v1954_v47 = vmax.f32 %v1312_v44, 0.0  ;;  %v2054_v58 = vmax.f32 %v1712_v45, 0.0  ;;  %v1323_v18 = vadd.f32 %v2983_v2, %v3762_v31 }
 0x147   :  { %v2764_v38 = vpack.c.bf16 %v2203_v30, %v2203_v30  ;;  %v2156_v27 = vmax.f32 %v4925_v39, %v2056_v36  ;;  %v1723_v54 = vadd.f32 %v3083_v19, %v3762_v31  ;;  %v1314_v26 = vpop.f32.mrf.mxu0  ;;  %v1714_v12 = vpop.f32.mrf.mxu1  ;;  %v4927_v42 = vmax.f32 %v4926_v59, 0.0 }
 0x148   :  { %v2154_v34 = vmax.f32 %v4929_v51, %v2054_v58  ;;  %v1957_v41 = vmax.f32 %v1323_v18, 0.0  ;;  %v1315_v44 = vadd.f32 %v3762_v31, %v1314_v26  ;;  %v1715_v36 = vadd.f32 %v3762_v31, %v1714_v12  ;;  %v4932_v12 = vld [vmem:[#allocation6_spill] sm:$0xff] }
 0x149   :  { %v2104_v29 = vmax.f32 %v4927_v42, %v1954_v47  ;;  %2454 = vst.msk [vmem:[%s4803_s3 + $0x4] sm:$0xf] %vm2452_vm3, %v2764_v38  ;;  %v2206_v45 = vmax.f32 %v2106_v7, %v2156_v27  ;;  %v2057_v30 = vmax.f32 %v1723_v54, 0.0  ;;  %v2986_v2 = vpop.f32.mrf.mxu0  ;;  %v3086_v19 = vpop.f32.mrf.mxu1  ;;  %v4931_v26 = vmax.f32 %v3840_v56, 0.0 }
 0x14a   :  { %v2107_v58 = vmax.f32 %v4930_v10, %v1957_v41  ;;  %v1955_v47 = vmax.f32 %v1315_v44, 0.0  ;;  %v1336_v18 = vadd.f32 %v2986_v2, %v3762_v31  ;;  %v2055_v38 = vmax.f32 %v1715_v36, 0.0 }
 0x14b   :  { %v2204_v42 = vmax.f32 %v2104_v29, %v2154_v34  ;;  %v2767_v39 = vpack.c.bf16 %v2206_v45, %v2206_v45  ;;  %v2157_v59 = vmax.f32 %v4931_v26, %v2057_v30  ;;  %v1736_v51 = vadd.f32 %v3086_v19, %v3762_v31  ;;  %v1327_v7 = vpop.f32.mrf.mxu0  ;;  %v1727_v27 = vpop.f32.mrf.mxu1 }
 0x14c   :  { %v4933_v53 = vmax.f32 %v4932_v12, 0.0  ;;  %v1960_v29 = vmax.f32 %v1336_v18, 0.0  ;;  %v1328_v40 = vadd.f32 %v3762_v31, %v1327_v7  ;;  %v4934_v56 = vmax.f32 %v3792_v43, 0.0 }
 0x14d   :  { %v2765_v54 = vpack.c.bf16 %v2204_v42, %v2204_v42  ;;  %2457 = vst.msk [vmem:[%s4803_s3 + $0x10] sm:$0xf] %vm2452_vm3, %v2767_v39  ;;  %v2207_v34 = vmax.f32 %v2107_v58, %v2157_v59  ;;  %v2060_v44 = vmax.f32 %v1736_v51, 0.0  ;;  %v1728_v45 = vadd.f32 %v3762_v31, %v1727_v27  ;;  %v2987_v30 = vpop.f32.mrf.mxu0  ;;  %v3087_v36 = vpop.f32.mrf.mxu1  ;;  %v4938_v51 = vld [vmem:[#allocation7_spill] sm:$0xff] }
 0x14e   :  { %v2105_v33 = vmax.f32 %v4933_v53, %v1955_v47  ;;  %v2155_v41 = vmax.f32 %v4934_v56, %v2055_v38  ;;  %v4935_v53 = vmax.f32 %v3864_v52, 0.0  ;;  %v1958_v19 = vmax.f32 %v1328_v40, 0.0  ;;  %v4936_v47 = vld [vmem:[#allocation14_spill] sm:$0xff]  ;;  %v4940_v40 = vld [vmem:[#allocation9_spill] sm:$0xff] }
 0x14f   :  { %2455 = vst.msk [vmem:[%s4803_s3 + $0x8] sm:$0xf] %vm2452_vm3, %v2765_v54  ;;  %v1339_v42 = vadd.f32 %v2987_v30, %v3762_v31  ;;  %v1739_v10 = vadd.f32 %v3087_v36, %v3762_v31  ;;  %v2768_v43 = vpack.c.bf16 %v2207_v34, %v2207_v34  ;;  %v4937_v18 = vmax.f32 %v4936_v47, 0.0  ;;  %v1330_v59 = vpop.f32.mrf.mxu0  ;;  %v1730_v38 = vpop.f32.mrf.mxu1 }
 0x150   :  { %v2110_v2 = vmax.f32 %v4935_v53, %v1960_v29  ;;  %v2205_v58 = vmax.f32 %v2105_v33, %v2155_v41  ;;  %v2058_v26 = vmax.f32 %v1728_v45, 0.0  ;;  %v4939_v7 = vmax.f32 %v4938_v51, 0.0 }
 0x151   :  { %v2160_v39 = vmax.f32 %v4937_v18, %v2060_v44  ;;  %v1961_v54 = vmax.f32 %v1339_v42, 0.0  ;;  %v2061_v12 = vmax.f32 %v1739_v10, 0.0  ;;  %v1331_v52 = vadd.f32 %v3762_v31, %v1330_v59  ;;  %2458 = vst.msk [vmem:[%s4803_s3 + $0x14] sm:$0xf] %vm2452_vm3, %v2768_v43  ;;  %v2990_v44 = vpop.f32.mrf.mxu0  ;;  %v3090_v45 = vpop.f32.mrf.mxu1 }
 0x152   :  { %v2108_v27 = vmax.f32 %v4939_v7, %v1958_v19  ;;  %v2766_v29 = vpack.c.bf16 %v2205_v58, %v2205_v58  ;;  %v4941_v34 = vmax.f32 %v4940_v40, 0.0  ;;  %v1731_v41 = vadd.f32 %v3762_v31, %v1730_v38 }
 0x153   :  { %v2210_v33 = vmax.f32 %v2110_v2, %v2160_v39  ;;  %v4942_v30 = vmax.f32 %v3887_v0, 0.0  ;;  %v4943_v53 = vmax.f32 %v3891_v48, 0.0  ;;  %v1959_v42 = vmax.f32 %v1331_v52, 0.0  ;;  %v1343_v18 = vpop.f32.mrf.mxu0  ;;  %v1743_v39 = vpop.f32.mrf.mxu1 }
 0x154   :  { %v2158_v56 = vmax.f32 %v4941_v34, %v2058_v26  ;;  %v1352_v10 = vadd.f32 %v2990_v44, %v3762_v31  ;;  %2456 = vst.msk [vmem:[%s4803_s3 + $0xc] sm:$0xf] %vm2452_vm3, %v2766_v29  ;;  %v2059_v58 = vmax.f32 %v1731_v41, 0.0  ;;  %v1752_v47 = vadd.f32 %v3090_v45, %v3762_v31  ;;  %v4944_v26 = vld [vmem:[#allocation10_spill] sm:$0xff] }
 0x155   :  { %v2111_v36 = vmax.f32 %v4942_v30, %v1961_v54  ;;  %v2161_v19 = vmax.f32 %v4943_v53, %v2061_v12  ;;  %v2771_v2 = vpack.c.bf16 %v2210_v33, %v2210_v33  ;;  %v4945_v59 = vmax.f32 %v4944_v26, 0.0  ;;  %v4946_v54 = vld [vmem:[#allocation11_spill] sm:$0xff]  ;;  %v2991_v33 = vpop.f32.mrf.mxu0  ;;  %v3091_v40 = vpop.f32.mrf.mxu1  ;;  %v4952_v26 = vld [vmem:[#allocation13_spill] sm:$0xff] }
 0x156   :  { %v2208_v43 = vmax.f32 %v2108_v27, %v2158_v56  ;;  %v1964_v38 = vmax.f32 %v1352_v10, 0.0  ;;  %v1344_v51 = vadd.f32 %v3762_v31, %v1343_v18  ;;  %v4947_v27 = vmax.f32 %v4946_v54, 0.0 }
 0x157   :  { %v2211_v0 = vmax.f32 %v2111_v36, %v2161_v19  ;;  %v2109_v48 = vmax.f32 %v4945_v59, %v1959_v42  ;;  %2461 = vst.msk [vmem:[%s4803_s3 + $0x20] sm:$0xf] %vm2452_vm3, %v2771_v2  ;;  %v2064_v52 = vmax.f32 %v1752_v47, 0.0  ;;  %v1744_v29 = vadd.f32 %v3762_v31, %v1743_v39  ;;  %v1346_v10 = vpop.f32.mrf.mxu0  ;;  %v1746_v2 = vpop.f32.mrf.mxu1 }
 0x158   :  { %v2769_v7 = vpack.c.bf16 %v2208_v43, %v2208_v43  ;;  %v2159_v12 = vmax.f32 %v4947_v27, %v2059_v58  ;;  %v4948_v56 = vmax.f32 %v3909_v4, 0.0  ;;  %v1962_v44 = vmax.f32 %v1344_v51, 0.0  ;;  %v4950_v4 = vld [vmem:[#allocation12_spill] sm:$0xff] }
 0x159   :  { %v2772_v34 = vpack.c.bf16 %v2211_v0, %v2211_v0  ;;  %v1355_v45 = vadd.f32 %v2991_v33, %v3762_v31  ;;  %v4949_v36 = vmax.f32 %v3915_v46, 0.0  ;;  %v2062_v19 = vmax.f32 %v1744_v29, 0.0  ;;  %v2994_v51 = vpop.f32.mrf.mxu0 }
 0x15a   :  { %v2114_v41 = vmax.f32 %v4948_v56, %v1964_v38  ;;  %2459 = vst.msk [vmem:[%s4803_s3 + $0x18] sm:$0xf] %vm2452_vm3, %v2769_v7  ;;  %v2209_v30 = vmax.f32 %v2109_v48, %v2159_v12  ;;  %v1755_v42 = vadd.f32 %v3091_v40, %v3762_v31  ;;  %v4951_v43 = vmax.f32 %v4950_v4, 0.0  ;;  %v3094_v7 = vpop.f32.mrf.mxu1 }
 0x15b   :  { %v2164_v53 = vmax.f32 %v4949_v36, %v2064_v52  ;;  %2462 = vst.msk [vmem:[%s4803_s3 + $0x24] sm:$0xf] %vm2452_vm3, %v2772_v34  ;;  %v1965_v47 = vmax.f32 %v1355_v45, 0.0  ;;  %v1347_v18 = vadd.f32 %v3762_v31, %v1346_v10  ;;  %v1747_v39 = vadd.f32 %v3762_v31, %v1746_v2 }
 0x15c   :  { %v2112_v58 = vmax.f32 %v4951_v43, %v1962_v44  ;;  %v2770_v46 = vpack.c.bf16 %v2209_v30, %v2209_v30  ;;  %v4953_v59 = vmax.f32 %v4952_v26, 0.0  ;;  %v2065_v38 = vmax.f32 %v1755_v42, 0.0  ;;  %v1359_v44 = vpop.f32.mrf.mxu0  ;;  %v1759_v45 = vpop.f32.mrf.mxu1 }
 0x15d   :  { %v2214_v0 = vmax.f32 %v2114_v41, %v2164_v53  ;;  %v4954_v54 = vmax.f32 %v3932_v5, 0.0  ;;  %v1963_v12 = vmax.f32 %v1347_v18, 0.0  ;;  %v2063_v52 = vmax.f32 %v1747_v39, 0.0  ;;  %v4956_v5 = vld [vmem:[#allocation15_spill] sm:$0xff] }
 0x15e   :  { %v2162_v48 = vmax.f32 %v4953_v59, %v2062_v19  ;;  %v1368_v29 = vadd.f32 %v2994_v51, %v3762_v31  ;;  %2460 = vst.msk [vmem:[%s4803_s3 + $0x1c] sm:$0xf] %vm2452_vm3, %v2770_v46  ;;  %v4955_v34 = vmax.f32 %v3936_v8, 0.0  ;;  %v1768_v41 = vadd.f32 %v3094_v7, %v3762_v31  ;;  %v4960_v59 = vld [vmem:[#allocation22_spill] sm:$0xff] }
 0x15f   :  { %v2115_v27 = vmax.f32 %v4954_v54, %v1965_v47  ;;  %v2775_v33 = vpack.c.bf16 %v2214_v0, %v2214_v0  ;;  %v4957_v30 = vmax.f32 %v4956_v5, 0.0  ;;  %v4958_v53 = vmax.f32 %v3883_v63, 0.0  ;;  %v3095_v47 = vpop.f32.mrf.mxu1 }
 0x160   :  { %v2212_v40 = vmax.f32 %v2112_v58, %v2162_v48  ;;  %v2165_v56 = vmax.f32 %v4955_v34, %v2065_v38  ;;  %v1968_v42 = vmax.f32 %v1368_v29, 0.0  ;;  %v1360_v10 = vadd.f32 %v3762_v31, %v1359_v44  ;;  %v2995_v58 = vpop.f32.mrf.mxu0 }
 0x161   :  { %v2113_v36 = vmax.f32 %v4957_v30, %v1963_v12  ;;  %v2163_v19 = vmax.f32 %v4958_v53, %v2063_v52  ;;  %2465 = vst.msk [vmem:[%s4803_s3 + $0x30] sm:$0xf] %vm2452_vm3, %v2775_v33  ;;  %v2068_v4 = vmax.f32 %v1768_v41, 0.0  ;;  %v1760_v43 = vadd.f32 %v3762_v31, %v1759_v45 }
 0x162   :  { %v2773_v8 = vpack.c.bf16 %v2212_v40, %v2212_v40  ;;  %v2215_v2 = vmax.f32 %v2115_v27, %v2165_v56  ;;  %v4959_v39 = vmax.f32 %v3960_v55, 0.0  ;;  %v1966_v46 = vmax.f32 %v1360_v10, 0.0  ;;  %v1362_v54 = vpop.f32.mrf.mxu0  ;;  %v1762_v27 = vpop.f32.mrf.mxu1  ;;  %v4962_v55 = vld [vmem:[#allocation16_spill] sm:$0xff]  ;;  %v4964_v56 = vld [vmem:[#allocation17_spill] sm:$0xff] }
 0x163   :  { %v2213_v18 = vmax.f32 %v2113_v36, %v2163_v19  ;;  %v1371_v0 = vadd.f32 %v2995_v58, %v3762_v31  ;;  %v4961_v48 = vmax.f32 %v4960_v59, 0.0  ;;  %v2066_v51 = vmax.f32 %v1760_v43, 0.0 }
 0x164   :  { %v2118_v63 = vmax.f32 %v4959_v39, %v1968_v42  ;;  %2463 = vst.msk [vmem:[%s4803_s3 + $0x28] sm:$0xf] %vm2452_vm3, %v2773_v8  ;;  %v2776_v26 = vpack.c.bf16 %v2215_v2, %v2215_v2  ;;  %v1771_v7 = vadd.f32 %v3095_v47, %v3762_v31  ;;  %v4963_v52 = vmax.f32 %v4962_v55, 0.0  ;;  %v2998_v30 = vpop.f32.mrf.mxu0  ;;  %v3098_v36 = vpop.f32.mrf.mxu1 }
 0x165   :  { %v2168_v38 = vmax.f32 %v4961_v48, %v2068_v4  ;;  %v2774_v12 = vpack.c.bf16 %v2213_v18, %v2213_v18  ;;  %v1969_v33 = vmax.f32 %v1371_v0, 0.0  ;;  %v1363_v40 = vadd.f32 %v3762_v31, %v1362_v54 }
 0x166   :  { %v2116_v29 = vmax.f32 %v4963_v52, %v1966_v46  ;;  %2466 = vst.msk [vmem:[%s4803_s3 + $0x34] sm:$0xf] %vm2452_vm3, %v2776_v26  ;;  %v4965_v41 = vmax.f32 %v4964_v56, 0.0  ;;  %v2069_v45 = vmax.f32 %v1771_v7, 0.0  ;;  %v1763_v5 = vadd.f32 %v3762_v31, %v1762_v27  ;;  %v1375_v18 = vpop.f32.mrf.mxu0  ;;  %v1775_v39 = vpop.f32.mrf.mxu1 }
 0x167   :  { %v2218_v34 = vmax.f32 %v2118_v63, %v2168_v38  ;;  %2464 = vst.msk [vmem:[%s4803_s3 + $0x2c] sm:$0xf] %vm2452_vm3, %v2774_v12  ;;  %v4966_v53 = vmax.f32 %v3983_v16, 0.0  ;;  %v1967_v42 = vmax.f32 %v1363_v40, 0.0  ;;  %v1384_v10 = vadd.f32 %v2998_v30, %v3762_v31  ;;  %v4968_v63 = vld [vmem:[#allocation18_spill] sm:$0xff] }
 0x168   :  { %v2166_v44 = vmax.f32 %v4965_v41, %v2066_v51  ;;  %v1784_v8 = vadd.f32 %v3098_v36, %v3762_v31  ;;  %v4967_v43 = vmax.f32 %v3987_v62, 0.0  ;;  %v2067_v47 = vmax.f32 %v1763_v5, 0.0  ;;  %v4970_v51 = vld [vmem:[#allocation19_spill] sm:$0xff]  ;;  %v2999_v27 = vpop.f32.mrf.mxu0  ;;  %v3099_v12 = vpop.f32.mrf.mxu1  ;;  %v4974_v36 = vld [vmem:[#allocation20_spill] sm:$0xff] }
 0x169   :  { %v2119_v19 = vmax.f32 %v4966_v53, %v1969_v33  ;;  %v2779_v2 = vpack.c.bf16 %v2218_v34, %v2218_v34  ;;  %v4969_v46 = vmax.f32 %v4968_v63, 0.0  ;;  %v1972_v26 = vmax.f32 %v1384_v10, 0.0  ;;  %v4978_v63 = vld [vmem:[#allocation29_spill] sm:$0xff] }
 0x16a   :  { %v2216_v4 = vmax.f32 %v2116_v29, %v2166_v44  ;;  %v2169_v58 = vmax.f32 %v4967_v43, %v2069_v45  ;;  %v2072_v59 = vmax.f32 %v1784_v8, 0.0  ;;  %v1376_v16 = vadd.f32 %v3762_v31, %v1375_v18  ;;  %v1378_v5 = vpop.f32.mrf.mxu0  ;;  %v1778_v30 = vpop.f32.mrf.mxu1  ;;  %v4976_v8 = vld [vmem:[#allocation21_spill] sm:$0xff] }
 0x16b   :  { %v2117_v0 = vmax.f32 %v4969_v46, %v1967_v42  ;;  %2469 = vst.msk [vmem:[%s4803_s3 + $0x40] sm:$0xf] %vm2452_vm3, %v2779_v2  ;;  %v4971_v62 = vmax.f32 %v4970_v51, 0.0  ;;  %v1776_v54 = vadd.f32 %v3762_v31, %v1775_v39  ;;  %v4972_v55 = vmax.f32 %v4005_v20, 0.0 }
 0x16c   :  { %v2777_v48 = vpack.c.bf16 %v2216_v4, %v2216_v4  ;;  %v2219_v38 = vmax.f32 %v2119_v19, %v2169_v58  ;;  %v4973_v29 = vmax.f32 %v4011_v50, 0.0  ;;  %v1970_v40 = vmax.f32 %v1376_v16, 0.0  ;;  %v3102_v18 = vpop.f32.mrf.mxu1 }
 0x16d   :  { %v2167_v7 = vmax.f32 %v4971_v62, %v2067_v47  ;;  %v2122_v52 = vmax.f32 %v4972_v55, %v1972_v26  ;;  %v1387_v34 = vadd.f32 %v2999_v27, %v3762_v31  ;;  %v2070_v44 = vmax.f32 %v1776_v54, 0.0  ;;  %v3002_v47 = vpop.f32.mrf.mxu0 }
 0x16e   :  { %v2172_v33 = vmax.f32 %v4973_v29, %v2072_v59  ;;  %2467 = vst.msk [vmem:[%s4803_s3 + $0x38] sm:$0xf] %vm2452_vm3, %v2777_v48  ;;  %v2780_v56 = vpack.c.bf16 %v2219_v38, %v2219_v38  ;;  %v1787_v45 = vadd.f32 %v3099_v12, %v3762_v31  ;;  %v4975_v53 = vmax.f32 %v4974_v36, 0.0  ;;  %v4980_v48 = vld [vmem:[#allocation30_spill] sm:$0xff]  ;;  %v1791_v27 = vpop.f32.mrf.mxu1  ;;  %v4982_v12 = vld [vmem:[#allocation23_spill] sm:$0xff]  ;;  %v4986_v36 = vld [vmem:[#allocation33_spill] sm:$0xff] }
 0x16f   :  { %v2217_v41 = vmax.f32 %v2117_v0, %v2167_v7  ;;  %v1973_v19 = vmax.f32 %v1387_v34, 0.0  ;;  %v1379_v42 = vadd.f32 %v3762_v31, %v1378_v5  ;;  %v4977_v2 = vmax.f32 %v4976_v8, 0.0  ;;  %v1391_v54 = vpop.f32.mrf.mxu0 }
 0x170   :  { %v2222_v20 = vmax.f32 %v2122_v52, %v2172_v33  ;;  %v2120_v50 = vmax.f32 %v4975_v53, %v1970_v40  ;;  %2470 = vst.msk [vmem:[%s4803_s3 + $0x44] sm:$0xf] %vm2452_vm3, %v2780_v56  ;;  %v2073_v43 = vmax.f32 %v1787_v45, 0.0  ;;  %v1779_v58 = vadd.f32 %v3762_v31, %v1778_v30 }
 0x171   :  { %v2778_v10 = vpack.c.bf16 %v2217_v41, %v2217_v41  ;;  %v2170_v4 = vmax.f32 %v4977_v2, %v2070_v44  ;;  %v4979_v46 = vmax.f32 %v4978_v63, 0.0  ;;  %v1971_v26 = vmax.f32 %v1379_v42, 0.0  ;;  %v4984_v41 = vld [vmem:[#allocation24_spill] sm:$0xff]  ;;  %v3003_v30 = vpop.f32.mrf.mxu0  ;;  %v4990_v63 = vld [vmem:[#allocation25_spill] sm:$0xff] }
 0x172   :  { %v2783_v39 = vpack.c.bf16 %v2222_v20, %v2222_v20  ;;  %v1400_v59 = vadd.f32 %v3002_v47, %v3762_v31  ;;  %v4981_v38 = vmax.f32 %v4980_v48, 0.0  ;;  %v2071_v62 = vmax.f32 %v1779_v58, 0.0  ;;  %v3103_v20 = vpop.f32.mrf.mxu1 }
 0x173   :  { %v2123_v0 = vmax.f32 %v4979_v46, %v1973_v19  ;;  %2468 = vst.msk [vmem:[%s4803_s3 + $0x3c] sm:$0xf] %vm2452_vm3, %v2778_v10  ;;  %v2220_v16 = vmax.f32 %v2120_v50, %v2170_v4  ;;  %v1800_v7 = vadd.f32 %v3102_v18, %v3762_v31  ;;  %v4983_v55 = vmax.f32 %v4982_v12, 0.0  ;;  %v4988_v4 = vld [vmem:[#allocation34_spill] sm:$0xff]  ;;  %v1394_v18 = vpop.f32.mrf.mxu0 }
 0x174   :  { %v2173_v51 = vmax.f32 %v4981_v38, %v2073_v43  ;;  %2473 = vst.msk [vmem:[%s4803_s3 + $0x50] sm:$0xf] %vm2452_vm3, %v2783_v39  ;;  %v1976_v29 = vmax.f32 %v1400_v59, 0.0  ;;  %v1392_v33 = vadd.f32 %v3762_v31, %v1391_v54  ;;  %v1792_v40 = vadd.f32 %v3762_v31, %v1791_v27  ;;  %v1794_v39 = vpop.f32.mrf.mxu1  ;;  %v4526_v38 = vld [vmem:[%s4802_s2] ss:$0 sm:$0xff] }
 0x175   :  { %v2121_v52 = vmax.f32 %v4983_v55, %v1971_v26  ;;  %v2781_v34 = vpack.c.bf16 %v2220_v16, %v2220_v16  ;;  %v4985_v44 = vmax.f32 %v4984_v41, 0.0  ;;  %v2076_v5 = vmax.f32 %v1800_v7, 0.0  ;;  %v4992_v26 = vld [vmem:[#allocation26_spill] sm:$0xff]  ;;  %v3006_v27 = vpop.f32.mrf.mxu0 }
 0x176   :  { %v2223_v56 = vmax.f32 %v2123_v0, %v2173_v51  ;;  %v4987_v53 = vmax.f32 %v4986_v36, 0.0  ;;  %v1974_v19 = vmax.f32 %v1392_v33, 0.0  ;;  %v2074_v42 = vmax.f32 %v1792_v40, 0.0  ;;  %v3106_v12 = vpop.f32.mrf.mxu1 }
 0x177   :  { %v2171_v45 = vmax.f32 %v4985_v44, %v2071_v62  ;;  %v1403_v10 = vadd.f32 %v3003_v30, %v3762_v31  ;;  %2471 = vst.msk [vmem:[%s4803_s3 + $0x48] sm:$0xf] %vm2452_vm3, %v2781_v34  ;;  %v4989_v43 = vmax.f32 %v4988_v4, 0.0  ;;  %v1803_v47 = vadd.f32 %v3103_v20, %v3762_v31 }
 0x178   :  { %v2126_v50 = vmax.f32 %v4987_v53, %v1976_v29  ;;  %v2784_v8 = vpack.c.bf16 %v2223_v56, %v2223_v56  ;;  %v4991_v46 = vmax.f32 %v4990_v63, 0.0  ;;  %v4993_v59 = vmax.f32 %v4992_v26, 0.0  ;;  %v1807_v30 = vpop.f32.mrf.mxu1 }
 0x179   :  { %v2221_v2 = vmax.f32 %v2121_v52, %v2171_v45  ;;  %v2176_v58 = vmax.f32 %v4989_v43, %v2076_v5  ;;  %v1977_v48 = vmax.f32 %v1403_v10, 0.0  ;;  %v1395_v51 = vadd.f32 %v4526_v38, %v1394_v18  ;;  %v1407_v5 = vpop.f32.mrf.mxu0 }
 0x17a   :  { %v2124_v0 = vmax.f32 %v4991_v46, %v1974_v19  ;;  %v2174_v16 = vmax.f32 %v4993_v59, %v2074_v42  ;;  %2474 = vst.msk [vmem:[%s4803_s3 + $0x54] sm:$0xf] %vm2452_vm3, %v2784_v8  ;;  %v2077_v7 = vmax.f32 %v1803_v47, 0.0  ;;  %v1795_v54 = vadd.f32 %v4526_v38, %v1794_v39 }
 0x17b   :  { %v2782_v31 = vpack.c.bf16 %v2221_v2, %v2221_v2  ;;  %v2226_v62 = vmax.f32 %v2126_v50, %v2176_v58  ;;  %v4994_v52 = vmax.f32 %v4079_v14, 0.0  ;;  %v1975_v33 = vmax.f32 %v1395_v51, 0.0  ;;  %v4996_v14 = vld [vmem:[#allocation27_spill] sm:$0xff]  ;;  %v3007_v43 = vpop.f32.mrf.mxu0  ;;  %v3107_v58 = vpop.f32.mrf.mxu1 }
 0x17c   :  { %v2224_v55 = vmax.f32 %v2124_v0, %v2174_v16  ;;  %v1416_v40 = vadd.f32 %v4526_v38, %v3006_v27  ;;  %v4995_v56 = vmax.f32 %v4083_v15, 0.0  ;;  %v2075_v44 = vmax.f32 %v1795_v54, 0.0  ;;  %v4998_v15 = vld [vmem:[#allocation28_spill] sm:$0xff] }
 0x17d   :  { %v2127_v29 = vmax.f32 %v4994_v52, %v1977_v48  ;;  %2472 = vst.msk [vmem:[%s4803_s3 + $0x4c] sm:$0xf] %vm2452_vm3, %v2782_v31  ;;  %v2787_v34 = vpack.c.bf16 %v2226_v62, %v2226_v62  ;;  %v1816_v45 = vadd.f32 %v4526_v38, %v3106_v12  ;;  %v4997_v36 = vmax.f32 %v4996_v14, 0.0  ;;  %v1410_v51 = vpop.f32.mrf.mxu0  ;;  %v1810_v31 = vpop.f32.mrf.mxu1  ;;  %v5002_v62 = vld [vmem:[#allocation31_spill] sm:$0xff] }
 0x17e   :  { %v2177_v41 = vmax.f32 %v4995_v56, %v2077_v7  ;;  %v2785_v20 = vpack.c.bf16 %v2224_v55, %v2224_v55  ;;  %v1980_v50 = vmax.f32 %v1416_v40, 0.0  ;;  %v1408_v19 = vadd.f32 %v4526_v38, %v1407_v5 }
 0x17f   :  { %v2125_v53 = vmax.f32 %v4997_v36, %v1975_v33  ;;  %2477 = vst.msk [vmem:[%s4803_s3 + $0x60] sm:$0xf] %vm2452_vm3, %v2787_v34  ;;  %v4999_v10 = vmax.f32 %v4998_v15, 0.0  ;;  %v2080_v2 = vmax.f32 %v1816_v45, 0.0  ;;  %v1808_v4 = vadd.f32 %v4526_v38, %v1807_v30  ;;  %v3010_v34 = vpop.f32.mrf.mxu0  ;;  %v3110_v56 = vpop.f32.mrf.mxu1  ;;  %v5008_v15 = vld [vmem:[#allocation35_spill] sm:$0xff] }
 0x180   :  { %v2227_v42 = vmax.f32 %v2127_v29, %v2177_v41  ;;  %2475 = vst.msk [vmem:[%s4803_s3 + $0x58] sm:$0xf] %vm2452_vm3, %v2785_v20  ;;  %v5000_v47 = vmax.f32 %v4101_v3, 0.0  ;;  %v1978_v39 = vmax.f32 %v1408_v19, 0.0  ;;  %v1419_v63 = vadd.f32 %v4526_v38, %v3007_v43  ;;  %v5004_v29 = vld [vmem:[#allocation32_spill] sm:$0xff] }
 0x181   :  { %v2175_v8 = vmax.f32 %v4999_v10, %v2075_v44  ;;  %v1819_v46 = vadd.f32 %v4526_v38, %v3107_v58  ;;  %v5001_v59 = vmax.f32 %v4107_v21, 0.0  ;;  %v2078_v48 = vmax.f32 %v1808_v4, 0.0  ;;  %v1423_v19 = vpop.f32.mrf.mxu0 }
 0x182   :  { %v2130_v18 = vmax.f32 %v5000_v47, %v1980_v50  ;;  %v2788_v0 = vpack.c.bf16 %v2227_v42, %v2227_v42  ;;  %v5003_v7 = vmax.f32 %v5002_v62, 0.0  ;;  %v1981_v27 = vmax.f32 %v1419_v63, 0.0  ;;  %v1823_v42 = vpop.f32.mrf.mxu1 }
 0x183   :  { %v2225_v26 = vmax.f32 %v2125_v53, %v2175_v8  ;;  %v2180_v16 = vmax.f32 %v5001_v59, %v2080_v2  ;;  %v2081_v12 = vmax.f32 %v1819_v46, 0.0  ;;  %v1411_v3 = vadd.f32 %v4526_v38, %v1410_v51 }
 0x184   :  { %v2128_v54 = vmax.f32 %v5003_v7, %v1978_v39  ;;  %2478 = vst.msk [vmem:[%s4803_s3 + $0x64] sm:$0xf] %vm2452_vm3, %v2788_v0  ;;  %v5005_v21 = vmax.f32 %v5004_v29, 0.0  ;;  %v1811_v40 = vadd.f32 %v4526_v38, %v1810_v31  ;;  %v5006_v41 = vmax.f32 %v4120_v24, 0.0  ;;  %v3011_v39 = vpop.f32.mrf.mxu0  ;;  %v3111_v63 = vpop.f32.mrf.mxu1 }
 0x185   :  { %v2786_v55 = vpack.c.bf16 %v2225_v26, %v2225_v26  ;;  %v2230_v52 = vmax.f32 %v2130_v18, %v2180_v16  ;;  %v5007_v45 = vmax.f32 %v4124_v49, 0.0  ;;  %v1979_v30 = vmax.f32 %v1411_v3, 0.0 }
 0x186   :  { %v2178_v33 = vmax.f32 %v5005_v21, %v2078_v48  ;;  %v2131_v44 = vmax.f32 %v5006_v41, %v1981_v27  ;;  %v1432_v20 = vadd.f32 %v4526_v38, %v3010_v34  ;;  %v2079_v53 = vmax.f32 %v1811_v40, 0.0  ;;  %v1826_v27 = vpop.f32.mrf.mxu1  ;;  %v5016_v40 = vld [vmem:[#allocation5_spill] sm:$0xff] }
 0x187   :  { %v2181_v5 = vmax.f32 %v5007_v45, %v2081_v12  ;;  %2476 = vst.msk [vmem:[%s4803_s3 + $0x5c] sm:$0xf] %vm2452_vm3, %v2786_v55  ;;  %v2791_v14 = vpack.c.bf16 %v2230_v52, %v2230_v52  ;;  %v1832_v50 = vadd.f32 %v4526_v38, %v3110_v56  ;;  %v5009_v10 = vmax.f32 %v5008_v15, 0.0 }
 0x188   :  { %v2228_v36 = vmax.f32 %v2128_v54, %v2178_v33  ;;  %v1984_v8 = vmax.f32 %v1432_v20, 0.0  ;;  %v1424_v2 = vadd.f32 %v4526_v38, %v1423_v19  ;;  %v5010_v43 = vmax.f32 %v4075_v32, 0.0  ;;  %v5012_v32 = vld [vmem:[#allocation39_spill] sm:$0xff]  ;;  %v1426_v54 = vpop.f32.mrf.mxu0  ;;  %v3114_v45 = vpop.f32.mrf.mxu1 }
 0x189   :  { %v2231_v24 = vmax.f32 %v2131_v44, %v2181_v5  ;;  %v2129_v49 = vmax.f32 %v5009_v10, %v1979_v30  ;;  %2481 = vst.msk [vmem:[%s4803_s3 + $0x70] sm:$0xf] %vm2452_vm3, %v2791_v14  ;;  %v2084_v47 = vmax.f32 %v1832_v50, 0.0  ;;  %v1824_v18 = vadd.f32 %v4526_v38, %v1823_v42 }
 0x18a   :  { %v2789_v4 = vpack.c.bf16 %v2228_v36, %v2228_v36  ;;  %v2179_v58 = vmax.f32 %v5010_v43, %v2079_v53  ;;  %v5011_v0 = vmax.f32 %v4144_v23, 0.0  ;;  %v1982_v59 = vmax.f32 %v1424_v2, 0.0  ;;  %v5014_v23 = vld [vmem:[#allocation4_spill] sm:$0xff]  ;;  %v3014_v44 = vpop.f32.mrf.mxu0  ;;  %v1839_v10 = vpop.f32.mrf.mxu1 }
 0x18b   :  { %v2792_v46 = vpack.c.bf16 %v2231_v24, %v2231_v24  ;;  %v1435_v16 = vadd.f32 %v4526_v38, %v3011_v39  ;;  %v5013_v51 = vmax.f32 %v5012_v32, 0.0  ;;  %v2082_v62 = vmax.f32 %v1824_v18, 0.0  ;;  %v5022_v2 = vld [vmem:[#allocation36_spill] sm:$0xff] }
 0x18c   :  { %v2134_v26 = vmax.f32 %v5011_v0, %v1984_v8  ;;  %2479 = vst.msk [vmem:[%s4803_s3 + $0x68] sm:$0xf] %vm2452_vm3, %v2789_v4  ;;  %v2229_v48 = vmax.f32 %v2129_v49, %v2179_v58  ;;  %v1835_v7 = vadd.f32 %v4526_v38, %v3111_v63  ;;  %v5015_v12 = vmax.f32 %v5014_v23, 0.0  ;;  %v1439_v15 = vpop.f32.mrf.mxu0  ;;  %v3115_v0 = vpop.f32.mrf.mxu1 }
 0x18d   :  { %v2184_v31 = vmax.f32 %v5013_v51, %v2084_v47  ;;  %2482 = vst.msk [vmem:[%s4803_s3 + $0x74] sm:$0xf] %vm2452_vm3, %v2792_v46  ;;  %v1985_v55 = vmax.f32 %v1435_v16, 0.0  ;;  %v1427_v52 = vadd.f32 %v4526_v38, %v1426_v54  ;;  %v1827_v29 = vadd.f32 %v4526_v38, %v1826_v27 }
 0x18e   :  { %v2132_v3 = vmax.f32 %v5015_v12, %v1982_v59  ;;  %v2790_v21 = vpack.c.bf16 %v2229_v48, %v2229_v48  ;;  %v5017_v34 = vmax.f32 %v5016_v40, 0.0  ;;  %v2085_v41 = vmax.f32 %v1835_v7, 0.0  ;;  %v3015_v46 = vpop.f32.mrf.mxu0  ;;  %v1842_v23 = vpop.f32.mrf.mxu1 }
 0x18f   :  { %v2234_v33 = vmax.f32 %v2134_v26, %v2184_v31  ;;  %v5018_v5 = vmax.f32 %v4163_v6, 0.0  ;;  %v1983_v20 = vmax.f32 %v1427_v52, 0.0  ;;  %v2083_v14 = vmax.f32 %v1827_v29, 0.0  ;;  %v5020_v6 = vld [vmem:[#allocation8_spill] sm:$0xff] }
 0x190   :  { %v2182_v56 = vmax.f32 %v5017_v34, %v2082_v62  ;;  %v1448_v36 = vadd.f32 %v4526_v38, %v3014_v44  ;;  %2480 = vst.msk [vmem:[%s4803_s3 + $0x6c] sm:$0xf] %vm2452_vm3, %v2790_v21  ;;  %v5019_v19 = vmax.f32 %v4167_v28, 0.0  ;;  %v1848_v24 = vadd.f32 %v4526_v38, %v3114_v45  ;;  %v1442_v27 = vpop.f32.mrf.mxu0  ;;  %v3118_v44 = vpop.f32.mrf.mxu1 }
 0x191   :  { %v2135_v30 = vmax.f32 %v5018_v5, %v1985_v55  ;;  %v2795_v53 = vpack.c.bf16 %v2234_v33, %v2234_v33  ;;  %v5021_v49 = vmax.f32 %v5020_v6, 0.0  ;;  %v5023_v4 = vmax.f32 %v5022_v2, 0.0  ;;  %v5033_v6 = vld [vmem:[#allocation40_spill] sm:$0xff] }
 0x192   :  { %v2232_v50 = vmax.f32 %v2132_v3, %v2182_v56  ;;  %v2185_v42 = vmax.f32 %v5019_v19, %v2085_v41  ;;  %v1988_v58 = vmax.f32 %v1448_v36, 0.0  ;;  %v1440_v47 = vadd.f32 %v4526_v38, %v1439_v15  ;;  %v3018_v41 = vpop.f32.mrf.mxu0 }
 0x193   :  { %v2133_v8 = vmax.f32 %v5021_v49, %v1983_v20  ;;  %v2183_v43 = vmax.f32 %v5023_v4, %v2083_v14  ;;  %2485 = vst.msk [vmem:[%s4803_s3 + $0x80] sm:$0xf] %vm2452_vm3, %v2795_v53  ;;  %v2088_v39 = vmax.f32 %v1848_v24, 0.0  ;;  %v1840_v63 = vadd.f32 %v4526_v38, %v1839_v10  ;;  %v1855_v10 = vpop.f32.mrf.mxu1 }
 0x194   :  { %v2793_v28 = vpack.c.bf16 %v2232_v50, %v2232_v50  ;;  %v2235_v18 = vmax.f32 %v2135_v30, %v2185_v42  ;;  %v5024_v59 = vmax.f32 %v4181_v11, 0.0  ;;  %v1986_v48 = vmax.f32 %v1440_v47, 0.0  ;;  %v5026_v11 = vld [vmem:[#allocation37_spill] sm:$0xff]  ;;  %v5031_v50 = vld [vmem:[#allocation46_spill] sm:$0xff]  ;;  %v1455_v15 = vpop.f32.mrf.mxu0 }
 0x195   :  { %v2233_v26 = vmax.f32 %v2133_v8, %v2183_v43  ;;  %v1451_v32 = vadd.f32 %v4526_v38, %v3015_v46  ;;  %v5025_v31 = vmax.f32 %v4187_v60, 0.0  ;;  %v2086_v7 = vmax.f32 %v1840_v63, 0.0  ;;  %v5028_v60 = vld [vmem:[#allocation38_spill] sm:$0xff]  ;;  %v5035_v47 = vld [vmem:[#allocation41_spill] sm:$0xff]  ;;  %v3119_v46 = vpop.f32.mrf.mxu1 }
 0x196   :  { %v2138_v16 = vmax.f32 %v5024_v59, %v1988_v58  ;;  %2483 = vst.msk [vmem:[%s4803_s3 + $0x78] sm:$0xf] %vm2452_vm3, %v2793_v28  ;;  %v2796_v51 = vpack.c.bf16 %v2235_v18, %v2235_v18  ;;  %v1851_v54 = vadd.f32 %v4526_v38, %v3115_v0  ;;  %v5027_v3 = vmax.f32 %v5026_v11, 0.0  ;;  %v3019_v63 = vpop.f32.mrf.mxu0  ;;  %v5038_v59 = vld [vmem:[#allocation49_spill] sm:$0xff] }
 0x197   :  { %v2188_v62 = vmax.f32 %v5025_v31, %v2088_v39  ;;  %v2794_v12 = vpack.c.bf16 %v2233_v26, %v2233_v26  ;;  %v1989_v52 = vmax.f32 %v1451_v32, 0.0  ;;  %v1443_v29 = vadd.f32 %v4526_v38, %v1442_v27 }
 0x198   :  { %v2136_v55 = vmax.f32 %v5027_v3, %v1986_v48  ;;  %2486 = vst.msk [vmem:[%s4803_s3 + $0x84] sm:$0xf] %vm2452_vm3, %v2796_v51  ;;  %v5029_v33 = vmax.f32 %v5028_v60, 0.0  ;;  %v2089_v34 = vmax.f32 %v1851_v54, 0.0  ;;  %v1843_v56 = vadd.f32 %v4526_v38, %v1842_v23  ;;  %v1458_v27 = vpop.f32.mrf.mxu0  ;;  %v1858_v23 = vpop.f32.mrf.mxu1 }
 0x199   :  { %v2238_v21 = vmax.f32 %v2138_v16, %v2188_v62  ;;  %2484 = vst.msk [vmem:[%s4803_s3 + $0x7c] sm:$0xf] %vm2452_vm3, %v2794_v12  ;;  %v5030_v45 = vmax.f32 %v4200_v13, 0.0  ;;  %v1987_v30 = vmax.f32 %v1443_v29, 0.0  ;;  %v1464_v20 = vadd.f32 %v4526_v38, %v3018_v41  ;;  %v5040_v12 = vld [vmem:[#allocation42_spill] sm:$0xff] }
 0x19a   :  { %v2186_v40 = vmax.f32 %v5029_v33, %v2086_v7  ;;  %v1864_v14 = vadd.f32 %v4526_v38, %v3118_v44  ;;  %v5032_v19 = vmax.f32 %v5031_v50, 0.0  ;;  %v2087_v24 = vmax.f32 %v1843_v56, 0.0  ;;  %v3022_v56 = vpop.f32.mrf.mxu0  ;;  %v3122_v41 = vpop.f32.mrf.mxu1 }
 0x19b   :  { %v2139_v5 = vmax.f32 %v5030_v45, %v1989_v52  ;;  %v2799_v36 = vpack.c.bf16 %v2238_v21, %v2238_v21  ;;  %v5034_v49 = vmax.f32 %v5033_v6, 0.0  ;;  %v1992_v2 = vmax.f32 %v1464_v20, 0.0  ;;  %v5042_v21 = vld [vmem:[#allocation43_spill] sm:$0xff] }
 0x19c   :  { %v2236_v53 = vmax.f32 %v2136_v55, %v2186_v40  ;;  %v2189_v42 = vmax.f32 %v5032_v19, %v2089_v34  ;;  %v2092_v4 = vmax.f32 %v1864_v14, 0.0  ;;  %v1456_v13 = vadd.f32 %v4526_v38, %v1455_v15 }
 0x19d   :  { %v2137_v8 = vmax.f32 %v5034_v49, %v1987_v30  ;;  %2489 = vst.msk [vmem:[%s4803_s3 + $0x90] sm:$0xf] %vm2452_vm3, %v2799_v36  ;;  %v5036_v28 = vmax.f32 %v5035_v47, 0.0  ;;  %v1856_v39 = vadd.f32 %v4526_v38, %v1855_v10  ;;  %v5037_v0 = vmax.f32 %v4223_v17, 0.0 }
 0x19e   :  { %v2797_v43 = vpack.c.bf16 %v2236_v53, %v2236_v53  ;;  %v2239_v58 = vmax.f32 %v2139_v5, %v2189_v42  ;;  %v5039_v16 = vmax.f32 %v5038_v59, 0.0  ;;  %v1990_v32 = vmax.f32 %v1456_v13, 0.0  ;;  %v1471_v42 = vpop.f32.mrf.mxu0 }
 0x19f   :  { %v2187_v18 = vmax.f32 %v5036_v28, %v2087_v24  ;;  %v2142_v26 = vmax.f32 %v5037_v0, %v1992_v2  ;;  %v1467_v51 = vadd.f32 %v4526_v38, %v3019_v63  ;;  %v2090_v7 = vmax.f32 %v1856_v39, 0.0  ;;  %v1871_v24 = vpop.f32.mrf.mxu1 }
 0x1a0   :  { %v2192_v48 = vmax.f32 %v5039_v16, %v2092_v4  ;;  %2487 = vst.msk [vmem:[%s4803_s3 + $0x88] sm:$0xf] %vm2452_vm3, %v2797_v43  ;;  %v2800_v31 = vpack.c.bf16 %v2239_v58, %v2239_v58  ;;  %v1867_v54 = vadd.f32 %v4526_v38, %v3119_v46  ;;  %v5041_v11 = vmax.f32 %v5040_v12, 0.0  ;;  %v5048_v4 = vld [vmem:[#allocation45_spill] sm:$0xff]  ;;  %v3023_v47 = vpop.f32.mrf.mxu0 }
 0x1a1   :  { %v2237_v62 = vmax.f32 %v2137_v8, %v2187_v18  ;;  %v1993_v55 = vmax.f32 %v1467_v51, 0.0  ;;  %v1459_v52 = vadd.f32 %v4526_v38, %v1458_v27  ;;  %v5043_v60 = vmax.f32 %v5042_v21, 0.0  ;;  %v3123_v28 = vpop.f32.mrf.mxu1 }
 0x1a2   :  { %v2242_v17 = vmax.f32 %v2142_v26, %v2192_v48  ;;  %v2140_v3 = vmax.f32 %v5041_v11, %v1990_v32  ;;  %2490 = vst.msk [vmem:[%s4803_s3 + $0x94] sm:$0xf] %vm2452_vm3, %v2800_v31  ;;  %v2093_v40 = vmax.f32 %v1867_v54, 0.0  ;;  %v1859_v34 = vadd.f32 %v4526_v38, %v1858_v23  ;;  %v1474_v51 = vpop.f32.mrf.mxu0  ;;  %v5054_v54 = vld [vmem:[#allocation48_spill] sm:$0xff] }
 0x1a3   :  { %v2798_v29 = vpack.c.bf16 %v2237_v62, %v2237_v62  ;;  %v2190_v33 = vmax.f32 %v5043_v60, %v2090_v7  ;;  %v5044_v45 = vmax.f32 %v4238_v35, 0.0  ;;  %v1991_v30 = vmax.f32 %v1459_v52, 0.0  ;;  %v5046_v35 = vld [vmem:[#allocation44_spill] sm:$0xff]  ;;  %v1874_v31 = vpop.f32.mrf.mxu1 }
 0x1a4   :  { %v2803_v44 = vpack.c.bf16 %v2242_v17, %v2242_v17  ;;  %v1480_v20 = vadd.f32 %v4526_v38, %v3022_v56  ;;  %v5045_v36 = vmax.f32 %v4241_v25, 0.0  ;;  %v2091_v50 = vmax.f32 %v1859_v34, 0.0  ;;  %v3026_v52 = vpop.f32.mrf.mxu0 }
 0x1a5   :  { %v2143_v5 = vmax.f32 %v5044_v45, %v1993_v55  ;;  %2488 = vst.msk [vmem:[%s4803_s3 + $0x8c] sm:$0xf] %vm2452_vm3, %v2798_v29  ;;  %v2240_v14 = vmax.f32 %v2140_v3, %v2190_v33  ;;  %v1880_v19 = vadd.f32 %v4526_v38, %v3122_v41  ;;  %v5047_v15 = vmax.f32 %v5046_v35, 0.0  ;;  %v3126_v29 = vpop.f32.mrf.mxu1 }
 0x1a6   :  { %v2193_v53 = vmax.f32 %v5045_v36, %v2093_v40  ;;  %2493 = vst.msk [vmem:[%s4803_s3 + $0xa0] sm:$0xf] %vm2452_vm3, %v2803_v44  ;;  %v1996_v6 = vmax.f32 %v1480_v20, 0.0  ;;  %v1472_v49 = vadd.f32 %v4526_v38, %v1471_v42  ;;  %v1872_v8 = vadd.f32 %v4526_v38, %v1871_v24 }
 0x1a7   :  { %v2141_v10 = vmax.f32 %v5047_v15, %v1991_v30  ;;  %v2801_v25 = vpack.c.bf16 %v2240_v14, %v2240_v14  ;;  %v5049_v13 = vmax.f32 %v5048_v4, 0.0  ;;  %v2096_v58 = vmax.f32 %v1880_v19, 0.0  ;;  %v1487_v30 = vpop.f32.mrf.mxu0  ;;  %v1887_v20 = vpop.f32.mrf.mxu1 }
 0x1a8   :  { %v2243_v2 = vmax.f32 %v2143_v5, %v2193_v53  ;;  %v5050_v18 = vmax.f32 %v4256_v1, 0.0  ;;  %v1994_v63 = vmax.f32 %v1472_v49, 0.0  ;;  %v2094_v46 = vmax.f32 %v1872_v8, 0.0  ;;  %v5052_v1 = vld [vmem:[#allocation47_spill] sm:$0xff] }
 0x1a9   :  { %v2191_v43 = vmax.f32 %v5049_v13, %v2091_v50  ;;  %v1483_v0 = vadd.f32 %v4526_v38, %v3023_v47  ;;  %2491 = vst.msk [vmem:[%s4803_s3 + $0x98] sm:$0xf] %vm2452_vm3, %v2801_v25  ;;  %v5051_v16 = vmax.f32 %v4260_v9, 0.0  ;;  %v1883_v32 = vadd.f32 %v4526_v38, %v3123_v28  ;;  %v3127_v49 = vpop.f32.mrf.mxu1  ;;  %v5062_v8 = vld [vmem:[#allocation55_spill] sm:$0xff]  ;;  %v5064_v28 = vld [vmem:[#allocation57_spill] sm:$0xff] }
 0x1aa   :  { %v2146_v39 = vmax.f32 %v5050_v18, %v1996_v6  ;;  %v2804_v26 = vpack.c.bf16 %v2243_v2, %v2243_v2  ;;  %v5053_v62 = vmax.f32 %v5052_v1, 0.0  ;;  %v5055_v27 = vmax.f32 %v5054_v54, 0.0  ;;  %v3027_v6 = vpop.f32.mrf.mxu0 }
 0x1ab   :  { %v2241_v59 = vmax.f32 %v2141_v10, %v2191_v43  ;;  %v2196_v48 = vmax.f32 %v5051_v16, %v2096_v58  ;;  %v1997_v17 = vmax.f32 %v1483_v0, 0.0  ;;  %v1475_v12 = vadd.f32 %v4526_v38, %v1474_v51  ;;  %v1890_v0 = vpop.f32.mrf.mxu1 }
 0x1ac   :  { %v2144_v7 = vmax.f32 %v5053_v62, %v1994_v63  ;;  %v2194_v23 = vmax.f32 %v5055_v27, %v2094_v46  ;;  %2494 = vst.msk [vmem:[%s4803_s3 + $0xa4] sm:$0xf] %vm2452_vm3, %v2804_v26  ;;  %v2097_v3 = vmax.f32 %v1883_v32, 0.0  ;;  %v1875_v55 = vadd.f32 %v4526_v38, %v1874_v31  ;;  %v1490_v46 = vpop.f32.mrf.mxu0  ;;  %v5066_v26 = vld [vmem:[#allocation52_spill] sm:$0xff]  ;;  %v5068_v62 = vld [vmem:[#allocation53_spill] sm:$0xff] }
 0x1ad   :  { %v2802_v9 = vpack.c.bf16 %v2241_v59, %v2241_v59  ;;  %v2246_v11 = vmax.f32 %v2146_v39, %v2196_v48  ;;  %v5056_v60 = vmax.f32 %v4267_v57, 0.0  ;;  %v1995_v40 = vmax.f32 %v1475_v12, 0.0  ;;  %v5058_v57 = vld [vmem:[#allocation50_spill] sm:$0xff] }
 0x1ae   :  { %v2244_v21 = vmax.f32 %v2144_v7, %v2194_v23  ;;  %v1496_v34 = vadd.f32 %v4526_v38, %v3026_v52  ;;  %v5057_v41 = vmax.f32 %v4270_v37, 0.0  ;;  %v2095_v45 = vmax.f32 %v1875_v55, 0.0  ;;  %v5060_v37 = vld [vmem:[#allocation51_spill] sm:$0xff]  ;;  %v5070_v23 = vld [vmem:[#allocation54_spill] sm:$0xff]  ;;  %v5073_v52 = vld [vmem:[#allocation56_spill] sm:$0xff] }
 0x1af   :  { %v2147_v33 = vmax.f32 %v5056_v60, %v1997_v17  ;;  %2492 = vst.msk [vmem:[%s4803_s3 + $0x9c] sm:$0xf] %vm2452_vm3, %v2802_v9  ;;  %v2807_v56 = vpack.c.bf16 %v2246_v11, %v2246_v11  ;;  %v1896_v5 = vadd.f32 %v4526_v38, %v3126_v29  ;;  %v5059_v36 = vmax.f32 %v5058_v57, 0.0 }
 0x1b0   :  { %v2197_v44 = vmax.f32 %v5057_v41, %v2097_v3  ;;  %v2805_v14 = vpack.c.bf16 %v2244_v21, %v2244_v21  ;;  %v2000_v50 = vmax.f32 %v1496_v34, 0.0  ;;  %v1488_v19 = vadd.f32 %v4526_v38, %v1487_v30 }
 0x1b1   :  { %v2145_v53 = vmax.f32 %v5059_v36, %v1995_v40  ;;  %2497 = vst.msk [vmem:[%s4803_s3 + $0xb0] sm:$0xf] %vm2452_vm3, %v2807_v56  ;;  %v5061_v24 = vmax.f32 %v5060_v37, 0.0  ;;  %v2100_v15 = vmax.f32 %v1896_v5, 0.0  ;;  %v1888_v10 = vadd.f32 %v4526_v38, %v1887_v20 }
 0x1b2   :  { %v2247_v42 = vmax.f32 %v2147_v33, %v2197_v44  ;;  %2495 = vst.msk [vmem:[%s4803_s3 + $0xa8] sm:$0xf] %vm2452_vm3, %v2805_v14  ;;  %v5063_v25 = vmax.f32 %v5062_v8, 0.0  ;;  %v1998_v4 = vmax.f32 %v1488_v19, 0.0  ;;  %v1499_v13 = vadd.f32 %v4526_v38, %v3027_v6 }
 0x1b3   :  { %v2195_v35 = vmax.f32 %v5061_v24, %v2095_v45  ;;  %v1899_v43 = vadd.f32 %v4526_v38, %v3127_v49  ;;  %v5065_v18 = vmax.f32 %v5064_v28, 0.0  ;;  %v2098_v63 = vmax.f32 %v1888_v10, 0.0 }
 0x1b4   :  { %v2150_v2 = vmax.f32 %v5063_v25, %v2000_v50  ;;  %v2808_v58 = vpack.c.bf16 %v2247_v42, %v2247_v42  ;;  %v5067_v59 = vmax.f32 %v5066_v26, 0.0  ;;  %v2001_v48 = vmax.f32 %v1499_v13, 0.0 }
 0x1b5   :  { %v2245_v47 = vmax.f32 %v2145_v53, %v2195_v35  ;;  %v2200_v39 = vmax.f32 %v5065_v18, %v2100_v15  ;;  %v2101_v32 = vmax.f32 %v1899_v43, 0.0  ;;  %v1491_v51 = vadd.f32 %v4526_v38, %v1490_v46 }
 0x1b6   :  { %v2148_v16 = vmax.f32 %v5067_v59, %v1998_v4  ;;  %2498 = vst.msk [vmem:[%s4803_s3 + $0xb4] sm:$0xf] %vm2452_vm3, %v2808_v58  ;;  %v5069_v7 = vmax.f32 %v5068_v62, 0.0  ;;  %v1891_v27 = vadd.f32 %v4526_v38, %v1890_v0  ;;  %v1949_v17 = vmax.f32 %v5070_v23, 0.0 }
 0x1b7   :  { %v2806_v31 = vpack.c.bf16 %v2245_v47, %v2245_v47  ;;  %v2250_v1 = vmax.f32 %v2150_v2, %v2200_v39  ;;  %v5071_v12 = vmax.f32 %v4301_v22, 0.0  ;;  %v5072_v11 = vmax.f32 %v4313_v61, 0.0 }
 0x1b8   :  { %v2198_v54 = vmax.f32 %v5069_v7, %v2098_v63  ;;  %v1999_v55 = vmax.f32 %v1491_v51, 0.0  ;;  %v2049_v29 = vmax.f32 %v5073_v52, 0.0  ;;  %v2099_v33 = vmax.f32 %v1891_v27, 0.0 }
 0x1b9   :  { %v2151_v9 = vmax.f32 %v5071_v12, %v2001_v48  ;;  %v2201_v3 = vmax.f32 %v5072_v11, %v2101_v32  ;;  %2496 = vst.msk [vmem:[%s4803_s3 + $0xac] sm:$0xf] %vm2452_vm3, %v2806_v31  ;;  %v2811_v21 = vpack.c.bf16 %v2250_v1, %v2250_v1 }
 0x1ba   :  { %v2248_v60 = vmax.f32 %v2148_v16, %v2198_v54  ;;  %v2149_v40 = vmax.f32 %v1949_v17, %v1999_v55  ;;  %v2199_v61 = vmax.f32 %v2049_v29, %v2099_v33 }
 0x1bb   :  { %v2251_v38 = vmax.f32 %v2151_v9, %v2201_v3  ;;  %2501 = vst.msk [vmem:[%s4803_s3 + $0xc0] sm:$0xf] %vm2452_vm3, %v2811_v21 }
 0x1bc   :  { %v2809_v22 = vpack.c.bf16 %v2248_v60, %v2248_v60  ;;  %v2249_v56 = vmax.f32 %v2149_v40, %v2199_v61 }
 0x1bd   :  { %v2812_v34 = vpack.c.bf16 %v2251_v38, %v2251_v38 }
 0x1be   :  { %2499 = vst.msk [vmem:[%s4803_s3 + $0xb8] sm:$0xf] %vm2452_vm3, %v2809_v22  ;;  %v2810_v41 = vpack.c.bf16 %v2249_v56, %v2249_v56 }
 0x1bf   :  { %2502 = vst.msk [vmem:[%s4803_s3 + $0xc4] sm:$0xf] %vm2452_vm3, %v2812_v34 }
 0x1c0   :  { %2500 = vst.msk [vmem:[%s4803_s3 + $0xbc] sm:$0xf] %vm2452_vm3, %v2810_v41 }

// kernel: lenet_forward.4
= control target key start
LH: loop header
LB: loop body
LE: loop exit
PB: predicated region body
PF: predicated region fallthrough
CT: control target
= control target key end

     0   :  { %v743_v0 = vmov 0   ;;  %vm274_vm0 = vcmask 179200   ;;  %vm323_vm1 = vcmask 1042432   ;;  %vm576_vm2 = vcmask 125952   ;;  %s1005_s1 = inlined_call_operand.vmem [shape: bf16[150,16], index: 1, kind: input, shape index: {}]   ;;  %s1006_s0 = inlined_call_operand.vmem [shape: bf16[4,64,150], index: 0, kind: input, shape index: {}]   ;;  %s1007_s2 = inlined_call_operand.vmem [shape: f32[1,16], index: 2, kind: input, shape index: {}]   ;;  %s1008_s3 = inlined_call_operand.vmem [shape: bf16[64,16], index: 3, kind: output, shape index: {}]  }
   0x1   :  { %327 = vmatprep.subr.bf16.mxu0 %v743_v0  ;;  %664 = vmatprep.subr.bf16.mxu1 %v743_v0  ;;  %v685_v1 = vld [vmem:[%s1005_s1 + $0x38] sm:$0xff]   ;;  %v686_v2 = vld [vmem:[%s1005_s1 + $0x30] sm:$0xff]   ;;  %v687_v3 = vld [vmem:[%s1005_s1 + $0x28] sm:$0xff]  }
   0x2   :  { %328 = vmatpush1.bf16.msra.mxu0 %v685_v1  ;;  %674 = vmatpush1.bf16.msra.mxu1 %v685_v1  ;;  %v688_v4 = vld [vmem:[%s1005_s1 + $0x20] sm:$0xff]   ;;  %v689_v7 = vld [vmem:[%s1005_s1 + $0x18] sm:$0xff]   ;;  %v690_v8 = vld [vmem:[%s1005_s1 + $0x10] sm:$0xff]  }
   0x3   :  { %329 = vmatprep.subr.bf16.mxu0 %v743_v0  ;;  %665 = vmatprep.subr.bf16.mxu1 %v743_v0  ;;  %v697_v5 = vld [vmem:[%s1006_s0 + $0x4] ss:$8 sps:$4 sm:$0xff]   ;;  %v693_v11 = vld [vmem:[%s1005_s1 + $0x48] ss:$0 sps:$4 sm:$0x77]  }
   0x4   :  { %632 = vmatprep.mubr.msk.bf16.mxu0 %vm274_vm0, %v697_v5  ;;  %v700_v6 = vld [vmem:[%s1006_s0 + $0x84] ss:$8 sps:$4 sm:$0xff]   ;;  %v325_v12 = vsel %vm323_vm1, %v693_v11, 0  ;;  %v695_v14 = vld [vmem:[%s1006_s0] ss:$8 sps:$4 sm:$0xff]  }
   0x5   :  { %640 = vmatprep.mubr.msk.bf16.mxu1 %vm274_vm0, %v700_v6  ;;  %v691_v9 = vld [vmem:[%s1005_s1 + $0x8] sm:$0xff]   ;;  %v692_v10 = vld [vmem:[%s1005_s1] sm:$0xff]   ;;  %v701_v16 = vld [vmem:[%s1006_s0 + $0x14] ss:$8 sps:$4 sm:$0xff]  }
   0x6   :  { %330 = vmatpush1.bf16.msra.mxu0 %v686_v2  ;;  %675 = vmatpush1.bf16.msra.mxu1 %v686_v2  ;;  %v694_v13 = vld [vmem:[%s1005_s1 + $0x40] sm:$0xff]   ;;  %v703_v17 = vld [vmem:[%s1006_s0 + $0x94] ss:$8 sps:$4 sm:$0xff]   ;;  %v705_v18 = vld [vmem:[%s1006_s0 + $0x10] ss:$8 sps:$4 sm:$0xff]  }
   0x7   :  { %331 = vmatprep.subr.bf16.mxu0 %v743_v0  ;;  %666 = vmatprep.subr.bf16.mxu1 %v743_v0  ;;  %v698_v15 = vld [vmem:[%s1006_s0 + $0x80] ss:$8 sps:$4 sm:$0xff]   ;;  %v706_v19 = vld [vmem:[%s1006_s0 + $0x90] ss:$8 sps:$4 sm:$0xff]   ;;  %v707_v20 = vld [vmem:[%s1006_s0 + $0x24] ss:$8 sps:$4 sm:$0xff]  }
   0x8   :  { %v709_v21 = vld [vmem:[%s1006_s0 + $0xa4] ss:$8 sps:$4 sm:$0xff]   ;;  %v711_v22 = vld [vmem:[%s1006_s0 + $0x20] ss:$8 sps:$4 sm:$0xff]   ;;  %v713_v24 = vld [vmem:[%s1006_s0 + $0x34] ss:$8 sps:$4 sm:$0xff]  }
   0x9   :  { %v712_v23 = vld [vmem:[%s1006_s0 + $0xa0] ss:$8 sps:$4 sm:$0xff]   ;;  %v715_v25 = vld [vmem:[%s1006_s0 + $0xb4] ss:$8 sps:$4 sm:$0xff]   ;;  %v717_v26 = vld [vmem:[%s1006_s0 + $0x30] ss:$8 sps:$4 sm:$0xff]  }
   0xa   :  { %332 = vmatpush1.bf16.msra.mxu0 %v687_v3  ;;  %676 = vmatpush1.bf16.msra.mxu1 %v687_v3  ;;  %v718_v27 = vld [vmem:[%s1006_s0 + $0xb0] ss:$8 sps:$4 sm:$0xff]   ;;  %v719_v28 = vld [vmem:[%s1006_s0 + $0x44] ss:$8 sps:$4 sm:$0xff]   ;;  %v723_v30 = vld [vmem:[%s1006_s0 + $0x40] ss:$8 sps:$4 sm:$0xff]  }
   0xb   :  { %333 = vmatprep.subr.bf16.mxu0 %v743_v0  ;;  %667 = vmatprep.subr.bf16.mxu1 %v743_v0  ;;  %v721_v29 = vld [vmem:[%s1006_s0 + $0xc4] ss:$8 sps:$4 sm:$0xff]   ;;  %v724_v31 = vld [vmem:[%s1006_s0 + $0xc0] ss:$8 sps:$4 sm:$0xff]   ;;  %v725_v32 = vld [vmem:[%s1006_s0 + $0x54] ss:$8 sps:$4 sm:$0xff]  }
   0xc   :  { %v727_v33 = vld [vmem:[%s1006_s0 + $0xd4] ss:$8 sps:$4 sm:$0xff]   ;;  %v729_v34 = vld [vmem:[%s1006_s0 + $0x50] ss:$8 sps:$4 sm:$0xff]   ;;  %v731_v36 = vld [vmem:[%s1006_s0 + $0x64] ss:$8 sps:$4 sm:$0xff]  }
   0xd   :  { %v730_v35 = vld [vmem:[%s1006_s0 + $0xd0] ss:$8 sps:$4 sm:$0xff]   ;;  %v733_v37 = vld [vmem:[%s1006_s0 + $0xe4] ss:$8 sps:$4 sm:$0xff]   ;;  %v735_v38 = vld [vmem:[%s1006_s0 + $0x60] ss:$8 sps:$4 sm:$0xff]  }
   0xe   :  { %334 = vmatpush1.bf16.msra.mxu0 %v688_v4  ;;  %677 = vmatpush1.bf16.msra.mxu1 %v688_v4  ;;  %v736_v39 = vld [vmem:[%s1006_s0 + $0xe0] ss:$8 sps:$4 sm:$0xff]   ;;  %v737_v40 = vld [vmem:[%s1006_s0 + $0x74] ss:$8 sps:$4 sm:$0xff]   ;;  %v741_v42 = vld [vmem:[%s1006_s0 + $0x70] ss:$8 sps:$4 sm:$0xff]  }
   0xf   :  { %335 = vmatprep.subr.bf16.mxu0 %v743_v0  ;;  %668 = vmatprep.subr.bf16.mxu1 %v743_v0  ;;  %v739_v41 = vld [vmem:[%s1006_s0 + $0xf4] ss:$8 sps:$4 sm:$0xff]   ;;  %v742_v43 = vld [vmem:[%s1006_s0 + $0xf0] ss:$8 sps:$4 sm:$0xff]  }
  0x12   :  { %336 = vmatpush1.bf16.msra.mxu0 %v689_v7  ;;  %678 = vmatpush1.bf16.msra.mxu1 %v689_v7 }
  0x13   :  { %337 = vmatprep.subr.bf16.mxu0 %v743_v0  ;;  %669 = vmatprep.subr.bf16.mxu1 %v743_v0 }
  0x16   :  { %338 = vmatpush1.bf16.msra.mxu0 %v690_v8  ;;  %679 = vmatpush1.bf16.msra.mxu1 %v690_v8  ;;  %v925_v8 = vld [vmem:[%s1007_s2] ss:$0 sm:$0xff] }
  0x17   :  { %339 = vmatprep.subr.bf16.mxu0 %v743_v0  ;;  %670 = vmatprep.subr.bf16.mxu1 %v743_v0 }
  0x1a   :  { %340 = vmatpush1.bf16.msra.mxu0 %v691_v9  ;;  %680 = vmatpush1.bf16.msra.mxu1 %v691_v9 }
  0x1b   :  { %341 = vmatprep.subr.bf16.mxu0 %v743_v0  ;;  %671 = vmatprep.subr.bf16.mxu1 %v743_v0 }
  0x1e   :  { %342 = vmatpush1.bf16.msra.mxu0 %v692_v10  ;;  %681 = vmatpush1.bf16.msra.mxu1 %v692_v10 }
  0x1f   :  { %355 = vmatprep.subr.bf16.mxu0 %v743_v0  ;;  %672 = vmatprep.subr.bf16.mxu1 %v743_v0 }
  0x22   :  { %356 = vmatpush2.bf16.msra.mxu0 %v325_v12  ;;  %682 = vmatpush2.bf16.msra.mxu1 %v325_v12 }
  0x23   :  { %357 = vmatprep.subr.bf16.mxu0 %v743_v0  ;;  %673 = vmatprep.subr.bf16.mxu1 %v743_v0 }
  0x26   :  { %358 = vmatpush2.bf16.msra.mxu0 %v694_v13  ;;  %683 = vmatpush2.bf16.msra.mxu1 %v694_v13 }
  0x29   :  { %360 = vmatmul.mubr.bf16.vlgmr.msra.gmra.mxu0 %v695_v14  ;;  %424 = vmatmul.mubr.bf16.vlgmr.msra.gmra.mxu1 %v698_v15 }
  0x2a   :  { %633 = vmatprep.mubr.msk.bf16.mxu0 %vm274_vm0, %v701_v16  ;;  %641 = vmatprep.mubr.msk.bf16.mxu1 %vm274_vm0, %v703_v17 }
  0x31   :  { %368 = vmatmul.mubr.bf16.gmra.mxu0 %v705_v18  ;;  %432 = vmatmul.mubr.bf16.gmra.mxu1 %v706_v19 }
  0x32   :  { %634 = vmatprep.mubr.msk.bf16.mxu0 %vm274_vm0, %v707_v20  ;;  %642 = vmatprep.mubr.msk.bf16.mxu1 %vm274_vm0, %v709_v21 }
  0x39   :  { %376 = vmatmul.mubr.bf16.gmra.mxu0 %v711_v22  ;;  %440 = vmatmul.mubr.bf16.gmra.mxu1 %v712_v23 }
  0x3a   :  { %635 = vmatprep.mubr.msk.bf16.mxu0 %vm274_vm0, %v713_v24  ;;  %643 = vmatprep.mubr.msk.bf16.mxu1 %vm274_vm0, %v715_v25 }
  0x41   :  { %384 = vmatmul.mubr.bf16.gmra.mxu0 %v717_v26  ;;  %448 = vmatmul.mubr.bf16.gmra.mxu1 %v718_v27 }
  0x42   :  { %636 = vmatprep.mubr.msk.bf16.mxu0 %vm274_vm0, %v719_v28  ;;  %644 = vmatprep.mubr.msk.bf16.mxu1 %vm274_vm0, %v721_v29 }
  0x49   :  { %392 = vmatmul.mubr.bf16.gmra.mxu0 %v723_v30  ;;  %456 = vmatmul.mubr.bf16.gmra.mxu1 %v724_v31 }
  0x4a   :  { %637 = vmatprep.mubr.msk.bf16.mxu0 %vm274_vm0, %v725_v32  ;;  %645 = vmatprep.mubr.msk.bf16.mxu1 %vm274_vm0, %v727_v33 }
  0x51   :  { %400 = vmatmul.mubr.bf16.gmra.mxu0 %v729_v34  ;;  %464 = vmatmul.mubr.bf16.gmra.mxu1 %v730_v35 }
  0x52   :  { %638 = vmatprep.mubr.msk.bf16.mxu0 %vm274_vm0, %v731_v36  ;;  %646 = vmatprep.mubr.msk.bf16.mxu1 %vm274_vm0, %v733_v37 }
  0x59   :  { %408 = vmatmul.mubr.bf16.gmra.mxu0 %v735_v38  ;;  %472 = vmatmul.mubr.bf16.gmra.mxu1 %v736_v39 }
  0x5a   :  { %639 = vmatprep.mubr.msk.bf16.mxu0 %vm274_vm0, %v737_v40  ;;  %647 = vmatprep.mubr.msk.bf16.mxu1 %vm274_vm0, %v739_v41 }
  0x61   :  { %416 = vmatmul.mubr.bf16.gmra.mxu0 %v741_v42  ;;  %480 = vmatmul.mubr.bf16.gmra.mxu1 %v742_v43 }
  0xe9   :  { %v361_v44 = vpop.f32.mrf.mxu0  ;;  %v425_v45 = vpop.f32.mrf.mxu1 }
  0xea   :  { %v362_v11 = vadd.f32 %v925_v8, %v361_v44  ;;  %v426_v14 = vadd.f32 %v925_v8, %v425_v45 }
  0xeb   :  { %v363_v46 = vpop.f32.mrf.mxu0  ;;  %v427_v47 = vpop.f32.mrf.mxu1 }
  0xec   :  { %v488_v19 = vmax.f32 %v362_v11, 0.0  ;;  %v504_v23 = vmax.f32 %v426_v14, 0.0 }
  0xed   :  { %v364_v48 = vpop.f32.mrf.mxu0  ;;  %v428_v49 = vpop.f32.mrf.mxu1 }
  0xee   :  { %v365_v20 = vadd.f32 %v925_v8, %v364_v48  ;;  %v429_v24 = vadd.f32 %v925_v8, %v428_v49 }
  0xef   :  { %v366_v50 = vpop.f32.mrf.mxu0  ;;  %v430_v51 = vpop.f32.mrf.mxu1 }
  0xf0   :  { %v489_v33 = vmax.f32 %v365_v20, 0.0  ;;  %v505_v37 = vmax.f32 %v429_v24, 0.0 }
  0xf1   :  { %v369_v52 = vpop.f32.mrf.mxu0  ;;  %v433_v53 = vpop.f32.mrf.mxu1 }
  0xf2   :  { %v370_v34 = vadd.f32 %v925_v8, %v369_v52  ;;  %v434_v41 = vadd.f32 %v925_v8, %v433_v53 }
  0xf3   :  { %v371_v54 = vpop.f32.mrf.mxu0  ;;  %v435_v55 = vpop.f32.mrf.mxu1 }
  0xf4   :  { %v490_v48 = vmax.f32 %v370_v34, 0.0 }
  0xf5   :  { %v906_v56 = vpop.f32.mrf.mxu0  ;;  %v908_v57 = vpop.f32.mrf.mxu1 }
  0xf6   :  { %v373_v52 = vadd.f32 %v925_v8, %v906_v56  ;;  %v437_v54 = vadd.f32 %v925_v8, %v908_v57 }
  0xf7   :  { %v374_v58 = vpop.f32.mrf.mxu0  ;;  %v438_v59 = vpop.f32.mrf.mxu1 }
  0xf8   :  { %v506_v58 = vmax.f32 %v434_v41, 0.0  ;;  %v491_v14 = vmax.f32 %v373_v52, 0.0 }
  0xf9   :  { %v910_v60 = vpop.f32.mrf.mxu0  ;;  %v912_v61 = vpop.f32.mrf.mxu1 }
  0xfa   :  { %v378_v57 = vadd.f32 %v925_v8, %v910_v60 }
  0xfb   :  { %v379_v62 = vpop.f32.mrf.mxu0  ;;  %v443_v63 = vpop.f32.mrf.mxu1 }
  0xfd   :  { %v914_v0 = vpop.f32.mrf.mxu0  ;;  %v916_v1 = vpop.f32.mrf.mxu1 }
  0xff   :  { %v382_v2 = vpop.f32.mrf.mxu0  ;;  %v446_v3 = vpop.f32.mrf.mxu1 }
 0x101   :  { %v918_v4 = vpop.f32.mrf.mxu0  ;;  %v920_v5 = vpop.f32.mrf.mxu1 }
 0x103   :  { %v387_v6 = vpop.f32.mrf.mxu0  ;;  %v451_v7 = vpop.f32.mrf.mxu1 }
 0x104   :  { %v442_v7 = vadd.f32 %v925_v8, %v912_v61 }
 0x105   :  { %v927_v9 = vpop.f32.mrf.mxu0  ;;  %v929_v10 = vpop.f32.mrf.mxu1 }
 0x106   :  { %v508_v24 = vmax.f32 %v442_v7, 0.0 }
 0x107   :  { %v390_v12 = vpop.f32.mrf.mxu0  ;;  %v454_v13 = vpop.f32.mrf.mxu1 }
 0x109   :  { %v393_v15 = vpop.f32.mrf.mxu0  ;;  %v457_v16 = vpop.f32.mrf.mxu1 }
 0x10a   :  { %v394_v17 = vadd.f32 %v925_v8, %v393_v15  ;;  %v458_v18 = vadd.f32 %v925_v8, %v457_v16  ;;  %v507_v15 = vmax.f32 %v437_v54, 0.0 }
 0x10b   :  { %v395_v21 = vpop.f32.mrf.mxu0  ;;  %v459_v22 = vpop.f32.mrf.mxu1 }
 0x10c   :  { %v496_v25 = vmax.f32 %v394_v17, 0.0  ;;  %v512_v26 = vmax.f32 %v458_v18, 0.0 }
 0x10d   :  { %v396_v27 = vpop.f32.mrf.mxu0  ;;  %v460_v28 = vpop.f32.mrf.mxu1 }
 0x10e   :  { %v520_v29 = vmax.f32 %v488_v19, %v496_v25  ;;  %v528_v30 = vmax.f32 %v504_v23, %v512_v26  ;;  %v397_v31 = vadd.f32 %v925_v8, %v396_v27  ;;  %v461_v32 = vadd.f32 %v925_v8, %v460_v28 }
 0x10f   :  { %v398_v35 = vpop.f32.mrf.mxu0  ;;  %v462_v36 = vpop.f32.mrf.mxu1  ;;  %v492_v23 = vmax.f32 %v378_v57, 0.0  ;;  %v381_v28 = vadd.f32 %v925_v8, %v914_v0  ;;  %v386_v0 = vadd.f32 %v925_v8, %v918_v4 }
 0x110   :  { %v536_v38 = vmax.f32 %v520_v29, %v528_v30  ;;  %v497_v39 = vmax.f32 %v397_v31, 0.0  ;;  %v513_v40 = vmax.f32 %v461_v32, 0.0  ;;  %v445_v32 = vadd.f32 %v925_v8, %v916_v1 }
 0x111   :  { %v401_v42 = vpop.f32.mrf.mxu0  ;;  %v465_v43 = vpop.f32.mrf.mxu1  ;;  %v493_v1 = vmax.f32 %v381_v28, 0.0  ;;  %v494_v52 = vmax.f32 %v386_v0, 0.0 }
 0x112   :  { %v656_v44 = vpack.c.bf16 %v536_v38, %v536_v38  ;;  %v521_v45 = vmax.f32 %v489_v33, %v497_v39  ;;  %v529_v46 = vmax.f32 %v505_v37, %v513_v40  ;;  %v402_v47 = vadd.f32 %v925_v8, %v401_v42 }
 0x113   :  { %v466_v49 = vadd.f32 %v925_v8, %v465_v43  ;;  %v403_v50 = vpop.f32.mrf.mxu0  ;;  %v467_v51 = vpop.f32.mrf.mxu1  ;;  %v450_v42 = vadd.f32 %v925_v8, %v920_v5  ;;  %v389_v5 = vadd.f32 %v925_v8, %v927_v9 }
 0x114   :  { %577 = vst.msk [vmem:[%s1008_s3] sm:$0xf] %vm576_vm2, %v656_v44  ;;  %v537_v53 = vmax.f32 %v521_v45, %v529_v46  ;;  %v498_v55 = vmax.f32 %v402_v47, 0.0  ;;  %v509_v45 = vmax.f32 %v445_v32, 0.0 }
 0x115   :  { %v514_v59 = vmax.f32 %v466_v49, 0.0  ;;  %v404_v62 = vpop.f32.mrf.mxu0  ;;  %v468_v63 = vpop.f32.mrf.mxu1 }
 0x116   :  { %v657_v2 = vpack.c.bf16 %v537_v53, %v537_v53  ;;  %v522_v3 = vmax.f32 %v490_v48, %v498_v55  ;;  %v405_v6 = vadd.f32 %v925_v8, %v404_v62  ;;  %v469_v56 = vadd.f32 %v925_v8, %v468_v63 }
 0x117   :  { %v530_v11 = vmax.f32 %v506_v58, %v514_v59  ;;  %v406_v12 = vpop.f32.mrf.mxu0  ;;  %v470_v13 = vpop.f32.mrf.mxu1  ;;  %v510_v58 = vmax.f32 %v450_v42, 0.0  ;;  %v453_v59 = vadd.f32 %v925_v8, %v929_v10 }
 0x118   :  { %578 = vst.msk [vmem:[%s1008_s3 + $0x4] sm:$0xf] %vm576_vm2, %v657_v2  ;;  %v499_v16 = vmax.f32 %v405_v6, 0.0  ;;  %v515_v17 = vmax.f32 %v469_v56, 0.0 }
 0x119   :  { %v538_v18 = vmax.f32 %v522_v3, %v530_v11  ;;  %v409_v19 = vpop.f32.mrf.mxu0  ;;  %v473_v20 = vpop.f32.mrf.mxu1  ;;  %v495_v11 = vmax.f32 %v389_v5, 0.0 }
 0x11a   :  { %v523_v21 = vmax.f32 %v491_v14, %v499_v16  ;;  %v531_v60 = vmax.f32 %v507_v15, %v515_v17  ;;  %v410_v22 = vadd.f32 %v925_v8, %v409_v19  ;;  %v474_v61 = vadd.f32 %v925_v8, %v473_v20 }
 0x11b   :  { %v658_v25 = vpack.c.bf16 %v538_v18, %v538_v18  ;;  %v411_v26 = vpop.f32.mrf.mxu0  ;;  %v475_v27 = vpop.f32.mrf.mxu1  ;;  %v511_v14 = vmax.f32 %v453_v59, 0.0 }
 0x11c   :  { %v539_v29 = vmax.f32 %v523_v21, %v531_v60  ;;  %v500_v30 = vmax.f32 %v410_v22, 0.0  ;;  %v516_v31 = vmax.f32 %v474_v61, 0.0 }
 0x11d   :  { %579 = vst.msk [vmem:[%s1008_s3 + $0x8] sm:$0xf] %vm576_vm2, %v658_v25  ;;  %v412_v33 = vpop.f32.mrf.mxu0  ;;  %v476_v34 = vpop.f32.mrf.mxu1 }
 0x11e   :  { %v659_v35 = vpack.c.bf16 %v539_v29, %v539_v29  ;;  %v524_v36 = vmax.f32 %v492_v23, %v500_v30  ;;  %v532_v37 = vmax.f32 %v508_v24, %v516_v31  ;;  %v413_v38 = vadd.f32 %v925_v8, %v412_v33 }
 0x11f   :  { %v477_v39 = vadd.f32 %v925_v8, %v476_v34  ;;  %v414_v40 = vpop.f32.mrf.mxu0  ;;  %v478_v41 = vpop.f32.mrf.mxu1 }
 0x120   :  { %580 = vst.msk [vmem:[%s1008_s3 + $0xc] sm:$0xf] %vm576_vm2, %v659_v35  ;;  %v540_v43 = vmax.f32 %v524_v36, %v532_v37  ;;  %v501_v44 = vmax.f32 %v413_v38, 0.0 }
 0x121   :  { %v517_v46 = vmax.f32 %v477_v39, 0.0  ;;  %v417_v47 = vpop.f32.mrf.mxu0  ;;  %v481_v48 = vpop.f32.mrf.mxu1 }
 0x122   :  { %v660_v4 = vpack.c.bf16 %v540_v43, %v540_v43  ;;  %v525_v49 = vmax.f32 %v493_v1, %v501_v44  ;;  %v418_v50 = vadd.f32 %v925_v8, %v417_v47  ;;  %v482_v51 = vadd.f32 %v925_v8, %v481_v48 }
 0x123   :  { %v533_v54 = vmax.f32 %v509_v45, %v517_v46  ;;  %v419_v53 = vpop.f32.mrf.mxu0  ;;  %v483_v55 = vpop.f32.mrf.mxu1 }
 0x124   :  { %581 = vst.msk [vmem:[%s1008_s3 + $0x10] sm:$0xf] %vm576_vm2, %v660_v4  ;;  %v502_v62 = vmax.f32 %v418_v50, 0.0  ;;  %v518_v63 = vmax.f32 %v482_v51, 0.0 }
 0x125   :  { %v541_v2 = vmax.f32 %v525_v49, %v533_v54  ;;  %v420_v3 = vpop.f32.mrf.mxu0  ;;  %v484_v6 = vpop.f32.mrf.mxu1 }
 0x126   :  { %v526_v56 = vmax.f32 %v494_v52, %v502_v62  ;;  %v534_v57 = vmax.f32 %v510_v58, %v518_v63  ;;  %v421_v9 = vadd.f32 %v925_v8, %v420_v3  ;;  %v485_v7 = vadd.f32 %v925_v8, %v484_v6 }
 0x127   :  { %v661_v12 = vpack.c.bf16 %v541_v2, %v541_v2  ;;  %v422_v13 = vpop.f32.mrf.mxu0  ;;  %v486_v10 = vpop.f32.mrf.mxu1 }
 0x128   :  { %v542_v15 = vmax.f32 %v526_v56, %v534_v57  ;;  %v503_v16 = vmax.f32 %v421_v9, 0.0  ;;  %v519_v17 = vmax.f32 %v485_v7, 0.0 }
 0x129   :  { %582 = vst.msk [vmem:[%s1008_s3 + $0x14] sm:$0xf] %vm576_vm2, %v661_v12 }
 0x12a   :  { %v662_v18 = vpack.c.bf16 %v542_v15, %v542_v15  ;;  %v527_v19 = vmax.f32 %v495_v11, %v503_v16  ;;  %v535_v20 = vmax.f32 %v511_v14, %v519_v17 }
 0x12c   :  { %583 = vst.msk [vmem:[%s1008_s3 + $0x18] sm:$0xf] %vm576_vm2, %v662_v18  ;;  %v543_v8 = vmax.f32 %v527_v19, %v535_v20 }
 0x12e   :  { %v663_v21 = vpack.c.bf16 %v543_v8, %v543_v8 }
 0x130   :  { %584 = vst.msk [vmem:[%s1008_s3 + $0x1c] sm:$0xf] %vm576_vm2, %v663_v21 }

// kernel: lenet_forward.5
= control target key start
LH: loop header
LB: loop body
LE: loop exit
PB: predicated region body
PF: predicated region fallthrough
CT: control target
= control target key end

     0   :  { %v743_v0 = vmov 0   ;;  %vm257_vm0 = vcmask 130048   ;;  %vm417_vm1 = vcmask 1043456   ;;  %v744_v31 = vmov 0.0   ;;  %s955_s1 = inlined_call_operand.vmem [shape: bf16[400,120], index: 1, kind: input, shape index: {}]   ;;  %s956_s0 = inlined_call_operand.vmem [shape: bf16[16,400], index: 0, kind: input, shape index: {}]   ;;  %s957_s3 = inlined_call_operand.vmem [shape: bf16[120,84], index: 3, kind: input, shape index: {}]   ;;  %s958_s5 = inlined_call_operand.vmem [shape: bf16[84,10], index: 5, kind: input, shape index: {}]   ;;  %s959_s2 = inlined_call_operand.vmem [shape: f32[1,120], index: 2, kind: input, shape index: {}]   ;;  %s960_s4 = inlined_call_operand.vmem [shape: f32[1,84], index: 4, kind: input, shape index: {}]   ;;  %s961_s6 = inlined_call_operand.vmem [shape: f32[1,10], index: 6, kind: input, shape index: {}]   ;;  %s962_s7 = inlined_call_operand.vmem [shape: f32[16,10], index: 7, kind: output, shape index: {}]  }
   0x1   :  { %302 = vmatprep.subr.bf16.mxu1 %v743_v0  ;;  %v698_v1 = vld [vmem:[%s955_s1 + $0x78] sm:$0xff]   ;;  %v701_v4 = vld [vmem:[%s955_s1 + $0x70] sm:$0xff]   ;;  %v704_v7 = vld [vmem:[%s955_s1 + $0x68] sm:$0xff]   ;;  %vm745_vm2 = vmmov 0   ;;  %vm520_vm3 = vcmask 1041408   ;;  %vm413_vm4 = vcmask 982016  }
   0x2   :  { %v699_v2 = vld [vmem:[%s955_s1 + $0xb8] sm:$0xff]   ;;  %621 = vmatprep.subr.bf16.mxu0 %v698_v1  ;;  %v702_v5 = vld [vmem:[%s955_s1 + $0xb0] sm:$0xff]   ;;  %v705_v8 = vld [vmem:[%s955_s1 + $0xa8] sm:$0xff]   ;;  %vm516_vm5 = vcmask 687104   ;;  %vm565_vm6 = vcmask 80896  }
   0x3   :  { %v700_v3 = vld [vmem:[%s955_s1 + $0x38] sm:$0xff]   ;;  %303 = vmatpush1.bf16.msra.mxu1 %v699_v2  ;;  %v703_v6 = vld [vmem:[%s955_s1 + $0x30] sm:$0xff]   ;;  %v706_v9 = vld [vmem:[%s955_s1 + $0x28] sm:$0xff]  }
   0x4   :  { %622 = vmatpush3.bf16.msra.mxu0 %v700_v3  ;;  %304 = vmatprep.subr.bf16.mxu1 %v743_v0  ;;  %v707_v10 = vld [vmem:[%s955_s1 + $0x60] sm:$0xff]   ;;  %v710_v13 = vld [vmem:[%s955_s1 + $0x58] sm:$0xff]   ;;  %v713_v16 = vld [vmem:[%s955_s1 + $0x50] sm:$0xff]  }
   0x5   :  { %623 = vmatprep.subr.bf16.mxu0 %v701_v4  ;;  %v708_v11 = vld [vmem:[%s955_s1 + $0xa0] sm:$0xff]   ;;  %v711_v14 = vld [vmem:[%s955_s1 + $0x98] sm:$0xff]   ;;  %v714_v17 = vld [vmem:[%s955_s1 + $0x90] sm:$0xff]  }
   0x6   :  { %v709_v12 = vld [vmem:[%s955_s1 + $0x20] sm:$0xff]   ;;  %v712_v15 = vld [vmem:[%s955_s1 + $0x18] sm:$0xff]   ;;  %v715_v18 = vld [vmem:[%s955_s1 + $0x10] sm:$0xff]  }
   0x7   :  { %305 = vmatpush1.bf16.msra.mxu1 %v702_v5  ;;  %v716_v19 = vld [vmem:[%s955_s1 + $0x48] sm:$0xff]   ;;  %v719_v22 = vld [vmem:[%s955_s1 + $0x40] sm:$0xff]   ;;  %v729_v27 = vld [vmem:[%s957_s3 + $0x38] ss:$0 sps:$4 sm:$0xff]  }
   0x8   :  { %624 = vmatpush3.bf16.msra.mxu0 %v703_v6  ;;  %306 = vmatprep.subr.bf16.mxu1 %v743_v0  ;;  %v717_v20 = vld [vmem:[%s955_s1 + $0x88] sm:$0xff]   ;;  %v724_v23 = vld [vmem:[%s956_s0 + $0x4] ss:$16 sps:$4 sm:$0xff]   ;;  %v722_v28 = vld [vmem:[%s956_s0] ss:$16 sps:$4 sm:$0xff]   ;;  %v419_v30 = vsel %vm417_vm1, %v729_v27, 0 }
   0x9   :  { %625 = vmatprep.subr.bf16.mxu0 %v704_v7  ;;  %v718_v21 = vld [vmem:[%s955_s1 + $0x8] sm:$0xff]   ;;  %v720_v24 = vld [vmem:[%s955_s1 + $0x80] sm:$0xff]   ;;  %293 = vmatprep.mubr.bf16.mxu0 %v724_v23  ;;  %v730_v33 = vld [vmem:[%s957_s3 + $0x30] sm:$0xff]  }
   0xa   :  { %v721_v25 = vld [vmem:[%s955_s1] sm:$0xff]   ;;  %v728_v26 = vld [vmem:[%s956_s0 + $0xc] ss:$16 sps:$4 sm:$0xff]   ;;  %v726_v32 = vld [vmem:[%s956_s0 + $0x8] ss:$16 sps:$4 sm:$0xff]  }
   0xb   :  { %307 = vmatpush1.bf16.msra.mxu1 %v705_v8  ;;  %602 = vmatprep.mubr.msk.bf16.mxu1 %vm257_vm0, %v728_v26  ;;  %v725_v29 = vld [vmem:[%s955_s1 + $0xc0] sm:$0xff]   ;;  %v731_v34 = vld [vmem:[%s957_s3 + $0x28] sm:$0xff]   ;;  %v733_v36 = vld [vmem:[%s957_s3 + $0x18] sm:$0xff]  }
   0xc   :  { %626 = vmatpush3.bf16.msra.mxu0 %v706_v9  ;;  %308 = vmatprep.subr.bf16.mxu1 %v743_v0  ;;  %v732_v35 = vld [vmem:[%s957_s3 + $0x20] sm:$0xff]   ;;  %v734_v37 = vld [vmem:[%s957_s3 + $0x10] sm:$0xff]   ;;  %v735_v38 = vld [vmem:[%s957_s3 + $0x8] sm:$0xff]  }
   0xd   :  { %627 = vmatprep.subr.bf16.mxu0 %v707_v10  ;;  %v736_v39 = vld [vmem:[%s957_s3] sm:$0xff]   ;;  %v737_v40 = vld [vmem:[%s958_s5 + $0x28] ss:$0 sps:$4 sm:$0x33]   ;;  %v739_v43 = vld [vmem:[%s958_s5 + $0x18] sm:$0xff]  }
   0xe   :  { %v522_v41 = vsel %vm520_vm3, %v737_v40, 0  ;;  %v738_v42 = vld [vmem:[%s958_s5 + $0x20] sm:$0xff]   ;;  %v740_v62 = vld [vmem:[%s958_s5 + $0x10] sm:$0xff]   ;;  %v741_v63 = vld [vmem:[%s958_s5 + $0x8] sm:$0xff]  }
   0xf   :  { %309 = vmatpush1.bf16.msra.mxu1 %v708_v11  ;;  %v572_v46 = vld [vmem:[%s959_s2] ss:$0 sm:$0xff] }
  0x10   :  { %628 = vmatpush3.bf16.msra.mxu0 %v709_v12  ;;  %310 = vmatprep.subr.bf16.mxu1 %v743_v0  ;;  %v603_v1 = vld [vmem:[%s960_s4] ss:$0 sm:$0xff] }
  0x11   :  { %629 = vmatprep.subr.bf16.mxu0 %v710_v13  ;;  %v613_v11 = vld [vmem:[%s961_s6] ss:$0 sm:$0xff] }
  0x13   :  { %311 = vmatpush1.bf16.msra.mxu1 %v711_v14 }
  0x14   :  { %630 = vmatpush3.bf16.msra.mxu0 %v712_v15  ;;  %312 = vmatprep.subr.bf16.mxu1 %v743_v0 }
  0x15   :  { %631 = vmatprep.subr.bf16.mxu0 %v713_v16 }
  0x17   :  { %313 = vmatpush1.bf16.msra.mxu1 %v714_v17 }
  0x18   :  { %632 = vmatpush3.bf16.msra.mxu0 %v715_v18  ;;  %314 = vmatprep.subr.bf16.mxu1 %v743_v0 }
  0x19   :  { %633 = vmatprep.subr.bf16.mxu0 %v716_v19 }
  0x1b   :  { %315 = vmatpush1.bf16.msra.mxu1 %v717_v20 }
  0x1c   :  { %634 = vmatpush3.bf16.msra.mxu0 %v718_v21  ;;  %316 = vmatprep.subr.bf16.mxu1 %v743_v0 }
  0x1d   :  { %635 = vmatprep.subr.bf16.mxu0 %v719_v22 }
  0x1f   :  { %317 = vmatpush1.bf16.msra.mxu1 %v720_v24 }
  0x20   :  { %636 = vmatpush3.bf16.msra.mxu0 %v721_v25  ;;  %332 = vmatprep.subr.bf16.mxu1 %v743_v0  ;;  %v742_v0 = vld [vmem:[%s958_s5] sm:$0xff]  }
  0x21   :  { %659 = vmatprep.subr.bf16.mxu0 %v744_v31 }
  0x23   :  { %294 = vmatmul.mubr.bf16.vlgmr.msra.gmra.mxu0 %v722_v28  ;;  %333 = vmatpush2.bf16.msra.mxu1 %v725_v29 }
  0x24   :  { %660 = vmatpush3.bf16.msra.mxu0 %v419_v30  ;;  %679 = vmatprep.subr.bf16.mxu1 %v744_v31 }
  0x25   :  { %661 = vmatprep.subr.bf16.mxu0 %v744_v31  ;;  %675 = vmatprep.mubr.msk.bf16.mxu0 %vm745_vm2, %v744_v31 }
  0x26   :  { %335 = vmatmul.mubr.bf16.vlgmr.msra.gmra.mxu1 %v726_v32 }
  0x27   :  { %691 = vmatprep.mubr.msk.bf16.mxu1 %vm745_vm2, %v744_v31  ;;  %680 = vmatpush3.bf16.msra.mxu1 %v522_v41 }
  0x28   :  { %662 = vmatpush3.bf16.msra.mxu0 %v730_v33  ;;  %681 = vmatprep.subr.bf16.mxu1 %v744_v31 }
  0x29   :  { %663 = vmatprep.subr.bf16.mxu0 %v744_v31 }
  0x2b   :  { %682 = vmatpush3.bf16.msra.mxu1 %v738_v42 }
  0x2c   :  { %664 = vmatpush3.bf16.msra.mxu0 %v731_v34  ;;  %683 = vmatprep.subr.bf16.mxu1 %v744_v31 }
  0x2d   :  { %665 = vmatprep.subr.bf16.mxu0 %v744_v31 }
  0x2f   :  { %684 = vmatpush3.bf16.msra.mxu1 %v739_v43 }
  0x30   :  { %666 = vmatpush3.bf16.msra.mxu0 %v732_v35  ;;  %685 = vmatprep.subr.bf16.mxu1 %v744_v31 }
  0x31   :  { %667 = vmatprep.subr.bf16.mxu0 %v744_v31 }
  0x33   :  { %686 = vmatpush3.bf16.msra.mxu1 %v740_v62 }
  0x34   :  { %668 = vmatpush3.bf16.msra.mxu0 %v733_v36  ;;  %687 = vmatprep.subr.bf16.mxu1 %v744_v31 }
  0x35   :  { %669 = vmatprep.subr.bf16.mxu0 %v744_v31 }
  0x37   :  { %688 = vmatpush3.bf16.msra.mxu1 %v741_v63 }
  0x38   :  { %670 = vmatpush3.bf16.msra.mxu0 %v734_v37  ;;  %689 = vmatprep.subr.bf16.mxu1 %v744_v31 }
  0x39   :  { %671 = vmatprep.subr.bf16.mxu0 %v744_v31 }
  0x3b   :  { %690 = vmatpush3.bf16.msra.mxu1 %v742_v0 }
  0x3c   :  { %672 = vmatpush3.bf16.msra.mxu0 %v735_v38 }
  0x3d   :  { %673 = vmatprep.subr.bf16.mxu0 %v744_v31 }
  0x40   :  { %674 = vmatpush3.bf16.msra.mxu0 %v736_v39 }
  0xe3   :  { %v637_v44 = vpop.f32.mrf.mxu0 }
  0xe5   :  { %v638_v45 = vpop.f32.mrf.mxu0 }
  0xe6   :  { %v639_v47 = vadd.f32 %v638_v45, %v637_v44  ;;  %v336_v48 = vpop.f32.mrf.mxu1 }
  0xe7   :  { %v640_v49 = vpop.f32.mrf.mxu0 }
  0xe8   :  { %v296_v50 = vadd.f32 %v639_v47, %v572_v46  ;;  %v338_v51 = vpop.f32.mrf.mxu1 }
  0xe9   :  { %v641_v52 = vpop.f32.mrf.mxu0 }
  0xea   :  { %v642_v53 = vadd.f32 %v641_v52, %v640_v49  ;;  %v339_v54 = vpop.f32.mrf.mxu1  ;;  %v337_v55 = vadd.f32 %v336_v48, %v296_v50 }
  0xec   :  { %v299_v56 = vadd.f32 %v642_v53, %v572_v46  ;;  %v341_v57 = vpop.f32.mrf.mxu1  ;;  %v343_v59 = vmax.f32 %v337_v55, 0.0 }
  0xee   :  { %v340_v58 = vadd.f32 %v339_v54, %v299_v56 }
  0xf0   :  { %v344_v60 = vmax.f32 %v340_v58, 0.0 }
  0xf2   :  { %v345_v61 = vpack.c.bf16 %v344_v60, %v343_v59 }
  0xf4   :  { %676 = vmatmul.mubr.msk.bf16.vlgmr.msra.gmra.mxu0 %vm413_vm4, %v345_v61 }
 0x1b4   :  { %v455_v2 = vpop.f32.mrf.mxu0 }
 0x1b5   :  { %v456_v4 = vadd.f32 %v603_v1, %v455_v2 }
 0x1b6   :  { %v677_v3 = vpop.f32.mrf.mxu0 }
 0x1b7   :  { %v462_v8 = vmax.f32 %v456_v4, 0.0 }
 0x1b8   :  { %v458_v5 = vpop.f32.mrf.mxu0 }
 0x1b9   :  { %v459_v6 = vadd.f32 %v603_v1, %v458_v5 }
 0x1ba   :  { %v678_v7 = vpop.f32.mrf.mxu0 }
 0x1bb   :  { %v463_v9 = vmax.f32 %v459_v6, 0.0 }
 0x1bd   :  { %v464_v10 = vpack.c.bf16 %v463_v9, %v462_v8 }
 0x1bf   :  { %692 = vmatmul.mubr.msk.bf16.vlgmr.msra.gmra.mxu1 %vm516_vm5, %v464_v10 }
 0x27f   :  { %v558_v12 = vpop.f32.mrf.mxu1 }
 0x280   :  { %v559_v13 = vadd.f32 %v613_v11, %v558_v12 }
 0x281   :  { %v693_v14 = vpop.f32.mrf.mxu1 }
 0x282   :  { %566 = vst.msk [vmem:[%s962_s7] sm:$0xff] %vm565_vm6, %v559_v13 }
 0x283   :  { %v561_v15 = vpop.f32.mrf.mxu1 }
 0x284   :  { %v562_v16 = vadd.f32 %v613_v11, %v561_v15 }
 0x285   :  { %v694_v17 = vpop.f32.mrf.mxu1 }
 0x286   :  { %567 = vst.msk [vmem:[%s962_s7 + $0x8] sm:$0xff] %vm565_vm6, %v562_v16 }

</bundles_post_ra>
